<compile_context>
chip_gen: v7x
topology: tpu7x:2x2x1
jax: 0.10.0
libtpu: 0.0.40
codegen_flags: <defaults>
</compile_context>

<pallas_src>
import functools

import jax
import jax.numpy as jnp
from jax.experimental import pallas as pl
from jax.experimental.pallas import tpu as pltpu


def _classifier_kernel(x_ref, w1_ref, b1_ref, w2_ref, b2_ref, out_ref):
    """x_ref: (TB, C, S) encoder features (native dtype); out_ref: (TB, NCpad)."""
    x = x_ref[...].astype(jnp.float32)               # upcast per tile, f32 accum
    # AdaptiveAvgPool2d((1,1)) + Flatten == mean over spatial (lane) axis.
    pooled = jnp.mean(x, axis=-1)                    # (TB, C), C on lanes

    # Linear(512 -> 256) + ReLU (MXU matmul, f32 accumulation).
    h = jnp.dot(pooled, w1_ref[...],
                preferred_element_type=jnp.float32) + b1_ref[...]
    h = jnp.maximum(h, 0.0)

    # Dropout(0.3): identity in eval mode (no-op).

    # Linear(256 -> num_classes_padded).
    logits = jnp.dot(h, w2_ref[...],
                     preferred_element_type=jnp.float32) + b2_ref[...]
    out_ref[...] = logits.astype(out_ref.dtype)


def prepare_classifier_params(w1, b1, w2, b2, *, num_classes):
    """One-time parameter prep (padding / reshape) hoisted out of the forward."""
    hid = w1.shape[1]                                # 256
    nc_pad = max(128, pl.cdiv(num_classes, 128) * 128)
    w1_f = w1.astype(jnp.float32)
    b1_2d = b1.reshape(1, hid).astype(jnp.float32)
    w2_p = jnp.zeros((hid, nc_pad), jnp.float32).at[:, :num_classes].set(
        w2.astype(jnp.float32))
    b2_p = jnp.zeros((1, nc_pad), jnp.float32).at[:, :num_classes].set(
        b2.astype(jnp.float32))
    return w1_f, b1_2d, w2_p, b2_p


def classifier_forward(feats_nchw, w1_f, b1_2d, w2_p, b2_p, *, num_classes):
    """feats_nchw: (B, 512, H, W) encoder output (PyTorch NCHW convention)."""
    B, C, H, W = feats_nchw.shape
    assert C == 512, "classifier head expects 512 encoder channels"
    S = H * W
    hid = w1_f.shape[1]
    nc_pad = w2_p.shape[1]
    assert num_classes <= nc_pad

    # Free view: NCHW -> (B, C, S). No transpose, no extra HBM pass.
    x = feats_nchw.reshape(B, C, S)
    itemsize = jnp.dtype(x.dtype).itemsize

    # Batch-tile so Pallas can double-buffer the HBM stream. Keep each x block
    # under ~8 MiB (2 buffers -> ~16 MiB, below the 32 MiB default scoped VMEM
    # limit; safe on v7x's 64 MiB VMEM as well).
    bytes_per_batch_row = C * S * itemsize
    rows_in_budget = max(1, (8 * 1024 * 1024) // bytes_per_batch_row)
    if B <= 8 or B <= rows_in_budget:
        TB = min(B, max(1, rows_in_budget)) if B > 8 else B
    else:
        TB = max(8, (rows_in_budget // 8) * 8)  # sublane-friendly output block
    grid = (pl.cdiv(B, TB),)

    weight_bytes = (C * hid + hid + hid * nc_pad + nc_pad) * 4
    cost = pl.CostEstimate(
        flops=2 * B * (C * hid + hid * nc_pad) + B * C * S,
        transcendentals=0,
        bytes_accessed=B * C * S * itemsize + weight_bytes + B * nc_pad * 4,
    )

    out = pl.pallas_call(
        _classifier_kernel,
        out_shape=jax.ShapeDtypeStruct((B, nc_pad), jnp.float32),
        grid_spec=pltpu.PrefetchScalarGridSpec(
            num_scalar_prefetch=0,
            grid=grid,
            in_specs=[
                pl.BlockSpec((TB, C, S),    lambda i: (i, 0, 0)),
                pl.BlockSpec((C, hid),      lambda i: (0, 0)),
                pl.BlockSpec((1, hid),      lambda i: (0, 0)),
                pl.BlockSpec((hid, nc_pad), lambda i: (0, 0)),
                pl.BlockSpec((1, nc_pad),   lambda i: (0, 0)),
            ],
            out_specs=pl.BlockSpec((TB, nc_pad), lambda i: (i, 0)),
        ),
        compiler_params=pltpu.CompilerParams(
            dimension_semantics=("parallel",)),
        cost_estimate=cost,
    )(x, w1_f, b1_2d, w2_p, b2_p)

    return out[:, :num_classes]


def _reference_forward(feats_nchw, w1, b1, w2, b2):
    pooled = jnp.mean(feats_nchw.astype(jnp.float32), axis=(2, 3))   # (B, 512)
    h = jnp.maximum(pooled @ w1 + b1, 0.0)
    return h @ w2 + b2


if __name__ == "__main__":
    num_classes = 10
    B, C, H, W = 2, 512, 4, 4     # small spatial size; channels fixed at 512

    key = jax.random.PRNGKey(0)
    k_x, k_w1, k_b1, k_w2, k_b2 = jax.random.split(key, 5)

    # Deterministic synthetic "encoded_image" features + head parameters.
    feats = jax.random.normal(k_x, (B, C, H, W), jnp.float32)
    w1 = jax.random.normal(k_w1, (512, 256), jnp.float32) * 0.02
    b1 = jax.random.normal(k_b1, (256,), jnp.float32) * 0.02
    w2 = jax.random.normal(k_w2, (256, num_classes), jnp.float32) * 0.02
    b2 = jax.random.normal(k_b2, (256,) + ()[:0], jnp.float32)[:num_classes] * 0.0  # placeholder, replaced below
    b2 = jax.random.normal(k_b2, (num_classes,), jnp.float32) * 0.02

    # One-time parameter prep (outside the per-call forward).
    w1_f, b1_2d, w2_p, b2_p = prepare_classifier_params(
        w1, b1, w2, b2, num_classes=num_classes)

    fwd = jax.jit(functools.partial(classifier_forward, num_classes=num_classes))
    logits = fwd(feats, w1_f, b1_2d, w2_p, b2_p)
    jax.block_until_ready(logits)

    ref = _reference_forward(feats, w1, b1, w2, b2)
    assert logits.shape == (B, num_classes), logits.shape
    assert jnp.allclose(logits, ref, atol=1e-4, rtol=1e-4), \
        float(jnp.max(jnp.abs(logits - ref)))

    print("KERNEL_OK")
</pallas_src>

<mosaic_0001>
module attributes {stable_mosaic.version = 11 : i64} {
  func.func @_classifier_kernel(%arg0: i32, %arg1: memref<2x512x16xf32, #tpu.memory_space<vmem>>, %arg2: memref<512x256xf32, #tpu.memory_space<vmem>>, %arg3: memref<1x256xf32, #tpu.memory_space<vmem>>, %arg4: memref<256x128xf32, #tpu.memory_space<vmem>>, %arg5: memref<1x128xf32, #tpu.memory_space<vmem>>, %arg6: memref<2x128xf32, #tpu.memory_space<vmem>>) attributes {dimension_semantics = [#tpu.dimension_semantics<parallel>], iteration_bounds = array<i64: 1>, scalar_prefetch = 0 : i64, scratch_operands = 0 : i64, tpu.core_type = #tpu.core_type<tc>, window_params = [{transform_indices = @transform_0, window_bounds = array<i64: 2, 512, 16>}, {pipeline_mode = #tpu.pipeline_mode<synchronous>, transform_indices = @transform_1, window_bounds = array<i64: 512, 256>}, {pipeline_mode = #tpu.pipeline_mode<synchronous>, transform_indices = @transform_2, window_bounds = array<i64: 1, 256>}, {pipeline_mode = #tpu.pipeline_mode<synchronous>, transform_indices = @transform_3, window_bounds = array<i64: 256, 128>}, {pipeline_mode = #tpu.pipeline_mode<synchronous>, transform_indices = @transform_4, window_bounds = array<i64: 1, 128>}, {transform_indices = @transform_5, window_bounds = array<i64: 2, 128>}]} {
    %c0 = arith.constant 0 : index
    %c0_0 = arith.constant 0 : index
    %c0_1 = arith.constant 0 : index
    %0 = vector.load %arg1[%c0, %c0_0, %c0_1] : memref<2x512x16xf32, #tpu.memory_space<vmem>>, vector<2x512x16xf32>
    %cst = arith.constant dense<0.000000e+00> : vector<2x512xf32>
    %1 = vector.multi_reduction <add>, %0, %cst [2] : vector<2x512x16xf32> to vector<2x512xf32>
    %cst_2 = arith.constant 1.600000e+01 : f32
    %2 = vector.broadcast %cst_2 : f32 to vector<2x512xf32>
    %3 = arith.divf %1, %2 : vector<2x512xf32>
    %c0_3 = arith.constant 0 : index
    %c0_4 = arith.constant 0 : index
    %4 = vector.load %arg2[%c0_3, %c0_4] : memref<512x256xf32, #tpu.memory_space<vmem>>, vector<512x256xf32>
    %cst_5 = arith.constant dense<0.000000e+00> : vector<2x256xf32>
    %5 = tpu.matmul %3, %4, %cst_5 {dimension_numbers = #tpu.dot_dimension_numbers<[1], [0], [0], [1], [0, 0, 1, 1], [], []>} : vector<2x512xf32>, vector<512x256xf32>, vector<2x256xf32> -> vector<2x256xf32>
    %c0_6 = arith.constant 0 : index
    %c0_7 = arith.constant 0 : index
    %6 = vector.load %arg3[%c0_6, %c0_7] : memref<1x256xf32, #tpu.memory_space<vmem>>, vector<1x256xf32>
    %7 = vector.broadcast %6 : vector<1x256xf32> to vector<2x256xf32>
    %8 = arith.addf %5, %7 : vector<2x256xf32>
    %cst_8 = arith.constant 0.000000e+00 : f32
    %9 = vector.broadcast %cst_8 : f32 to vector<2x256xf32>
    %10 = arith.maximumf %8, %9 : vector<2x256xf32>
    %c0_9 = arith.constant 0 : index
    %c0_10 = arith.constant 0 : index
    %11 = vector.load %arg4[%c0_9, %c0_10] : memref<256x128xf32, #tpu.memory_space<vmem>>, vector<256x128xf32>
    %cst_11 = arith.constant dense<0.000000e+00> : vector<2x128xf32>
    %12 = tpu.matmul %10, %11, %cst_11 {dimension_numbers = #tpu.dot_dimension_numbers<[1], [0], [0], [1], [0, 0, 1, 1], [], []>} : vector<2x256xf32>, vector<256x128xf32>, vector<2x128xf32> -> vector<2x128xf32>
    %c0_12 = arith.constant 0 : index
    %c0_13 = arith.constant 0 : index
    %13 = vector.load %arg5[%c0_12, %c0_13] : memref<1x128xf32, #tpu.memory_space<vmem>>, vector<1x128xf32>
    %14 = vector.broadcast %13 : vector<1x128xf32> to vector<2x128xf32>
    %15 = arith.addf %12, %14 : vector<2x128xf32>
    %c0_14 = arith.constant 0 : index
    %c0_15 = arith.constant 0 : index
    %16 = vector.load %arg6[%c0_14, %c0_15] : memref<2x128xf32, #tpu.memory_space<vmem>>, vector<2x128xf32>
    tpu.vector_store %arg6[%c0_14, %c0_15], %15 {strides = array<i32>} : memref<2x128xf32, #tpu.memory_space<vmem>>, vector<2x128xf32>,
    return
  }
  func.func @transform_0(%arg0: i32) -> (i32, i32, i32) {
    %c0_i32 = arith.constant 0 : i32
    %c0_i32_0 = arith.constant 0 : i32
    %c0_i32_1 = arith.constant 0 : i32
    return %arg0, %c0_i32, %c0_i32_0 : i32, i32, i32
  }
  func.func @transform_1(%arg0: i32) -> (i32, i32) {
    %c0_i32 = arith.constant 0 : i32
    %c0_i32_0 = arith.constant 0 : i32
    %c0_i32_1 = arith.constant 0 : i32
    return %c0_i32, %c0_i32_0 : i32, i32
  }
  func.func @transform_2(%arg0: i32) -> (i32, i32) {
    %c0_i32 = arith.constant 0 : i32
    %c0_i32_0 = arith.constant 0 : i32
    %c0_i32_1 = arith.constant 0 : i32
    return %c0_i32, %c0_i32_0 : i32, i32
  }
  func.func @transform_3(%arg0: i32) -> (i32, i32) {
    %c0_i32 = arith.constant 0 : i32
    %c0_i32_0 = arith.constant 0 : i32
    %c0_i32_1 = arith.constant 0 : i32
    return %c0_i32, %c0_i32_0 : i32, i32
  }
  func.func @transform_4(%arg0: i32) -> (i32, i32) {
    %c0_i32 = arith.constant 0 : i32
    %c0_i32_0 = arith.constant 0 : i32
    %c0_i32_1 = arith.constant 0 : i32
    return %c0_i32, %c0_i32_0 : i32, i32
  }
  func.func @transform_5(%arg0: i32) -> (i32, i32) {
    %c0_i32 = arith.constant 0 : i32
    %c0_i32_0 = arith.constant 0 : i32
    return %arg0, %c0_i32 : i32, i32
  }
}

</mosaic_0001>

<bundles_post_ra>
// kernel: classifier_forward.1
= control target key start
LH: loop header
LB: loop body
LE: loop exit
PB: predicated region body
PF: predicated region fallthrough
CT: control target
= control target key end

     0   :  { %vm149_vm0 = vcmask 130048   ;;  %s3670_s0 = inlined_call_operand.vmem [shape: f32[2,512,16], index: 0, kind: input, shape index: {}]   ;;  %s3671_s1 = inlined_call_operand.vmem [shape: f32[512,256], index: 1, kind: input, shape index: {}]   ;;  %s3672_s2 = inlined_call_operand.vmem [shape: f32[1,256], index: 2, kind: input, shape index: {}]   ;;  %s3673_s3 = inlined_call_operand.vmem [shape: f32[256,128], index: 3, kind: input, shape index: {}]   ;;  %s3674_s4 = inlined_call_operand.vmem [shape: f32[1,128], index: 4, kind: input, shape index: {}]   ;;  %s3675_s5 = inlined_call_operand.hbm [shape: f32[2,128], index: 5, kind: output, shape index: {}]  }
   0x1   :  { %v101_v0 = vld [vmem:[%s3670_s0 + $0x280] sm:$0xff]  ;;  %v102_v2 = vld [vmem:[%s3670_s0 + $0x288] sm:$0xff]  ;;  %v39_v13 = vld [vmem:[%s3670_s0 + $0x90] sm:$0xff] }
   0x2   :  { %v37_v1 = vld [vmem:[%s3670_s0 + $0x80] sm:$0xff]  ;;  %v390_v3 = vsel %vm149_vm0, %v101_v0, 0.0  ;;  %v38_v5 = vld [vmem:[%s3670_s0 + $0x88] sm:$0xff]  ;;  %v393_v6 = vsel %vm149_vm0, %v102_v2, 0.0  ;;  %v204_v15 = vsel %vm149_vm0, %v39_v13, 0.0  ;;  %v103_v16 = vld [vmem:[%s3670_s0 + $0x290] sm:$0xff] }
   0x3   :  { %v198_v4 = vsel %vm149_vm0, %v37_v1, 0.0  ;;  %391 = vadd.xlane.f32.xlu1 %v390_v3  ;;  %v201_v7 = vsel %vm149_vm0, %v38_v5, 0.0  ;;  %v22_v8 = vld [vmem:[%s3670_s0 + $0x8] sm:$0xff]  ;;  %v21_v9 = vld [vmem:[%s3670_s0] sm:$0xff]  ;;  %v396_v18 = vsel %vm149_vm0, %v103_v16, 0.0  ;;  %v40_v20 = vld [vmem:[%s3670_s0 + $0x98] sm:$0xff] }
   0x4   :  { %199 = vadd.xlane.f32.xlu0 %v198_v4  ;;  %v153_v10 = vsel %vm149_vm0, %v22_v8, 0.0  ;;  %v150_v11 = vsel %vm149_vm0, %v21_v9, 0.0  ;;  %v85_v12 = vld [vmem:[%s3670_s0 + $0x200] sm:$0xff]  ;;  %v86_v17 = vld [vmem:[%s3670_s0 + $0x208] sm:$0xff]  ;;  %v23_v21 = vld [vmem:[%s3670_s0 + $0x10] sm:$0xff]  ;;  %v207_v22 = vsel %vm149_vm0, %v40_v20, 0.0 }
   0x5   :  { %v342_v14 = vsel %vm149_vm0, %v85_v12, 0.0  ;;  %v345_v19 = vsel %vm149_vm0, %v86_v17, 0.0  ;;  %v156_v23 = vsel %vm149_vm0, %v23_v21, 0.0  ;;  %v70_v24 = vld [vmem:[%s3670_s0 + $0x188] sm:$0xff]  ;;  %v69_v25 = vld [vmem:[%s3670_s0 + $0x180] sm:$0xff]  ;;  %v104_v28 = vld [vmem:[%s3670_s0 + $0x298] sm:$0xff] }
   0x6   :  { %v297_v26 = vsel %vm149_vm0, %v70_v24, 0.0  ;;  %v294_v27 = vsel %vm149_vm0, %v69_v25, 0.0  ;;  %v87_v29 = vld [vmem:[%s3670_s0 + $0x210] sm:$0xff] }
   0x7   :  { %394 = vadd.xlane.f32.xlu1 %v393_v6 }
   0x8   :  { %202 = vadd.xlane.f32.xlu0 %v201_v7 }
   0xb   :  { %154 = vadd.xlane.f32.xlu1 %v153_v10 }
   0xc   :  { %151 = vadd.xlane.f32.xlu0 %v150_v11 }
   0xf   :  { %343 = vadd.xlane.f32.xlu1 %v342_v14 }
  0x10   :  { %205 = vadd.xlane.f32.xlu0 %v204_v15 }
  0x13   :  { %397 = vadd.xlane.f32.xlu1 %v396_v18 }
  0x14   :  { %346 = vadd.xlane.f32.xlu0 %v345_v19 }
  0x17   :  { %208 = vadd.xlane.f32.xlu1 %v207_v22 }
  0x18   :  { %157 = vadd.xlane.f32.xlu0 %v156_v23 }
  0x1b   :  { %298 = vadd.xlane.f32.xlu1 %v297_v26 }
  0x1c   :  { %295 = vadd.xlane.f32.xlu0 %v294_v27 }
  0x1d   :  { %10 = vsyncpa [#allocation3], 0  ;;  %v399_v30 = vsel %vm149_vm0, %v104_v28, 0.0  ;;  %v348_v31 = vsel %vm149_vm0, %v87_v29, 0.0  ;;  %v134_v32 = vld [vmem:[%s3670_s0 + $0x388] sm:$0xff]  ;;  %v133_v33 = vld [vmem:[%s3670_s0 + $0x380] sm:$0xff] }
  0x1e   :  { %v489_v34 = vsel %vm149_vm0, %v134_v32, 0.0  ;;  %v486_v35 = vsel %vm149_vm0, %v133_v33, 0.0  ;;  %v41_v36 = vld [vmem:[%s3670_s0 + $0xa0] sm:$0xff]  ;;  %v24_v37 = vld [vmem:[%s3670_s0 + $0x18] sm:$0xff]  ;;  %v54_v40 = vld [vmem:[%s3670_s0 + $0x108] sm:$0xff]  ;;  %vm942_vm1 = vcmask 130112  }
  0x1f   :  { %400 = vadd.xlane.f32.xlu1 %v399_v30  ;;  %v210_v38 = vsel %vm149_vm0, %v41_v36, 0.0  ;;  %v159_v39 = vsel %vm149_vm0, %v24_v37, 0.0  ;;  %v53_v41 = vld [vmem:[%s3670_s0 + $0x100] sm:$0xff]  ;;  %v249_v42 = vsel %vm149_vm0, %v54_v40, 0.0  ;;  %v88_v44 = vld [vmem:[%s3670_s0 + $0x218] sm:$0xff]  ;;  %v71_v45 = vld [vmem:[%s3670_s0 + $0x190] sm:$0xff] }
  0x20   :  { %349 = vadd.xlane.f32.xlu0 %v348_v31  ;;  %v246_v43 = vsel %vm149_vm0, %v53_v41, 0.0  ;;  %v351_v46 = vsel %vm149_vm0, %v88_v44, 0.0  ;;  %v300_v47 = vsel %vm149_vm0, %v71_v45, 0.0  ;;  %v117_v48 = vld [vmem:[%s3670_s0 + $0x300] sm:$0xff]  ;;  %v135_v52 = vld [vmem:[%s3670_s0 + $0x390] sm:$0xff]  ;;  %v118_v53 = vld [vmem:[%s3670_s0 + $0x308] sm:$0xff] }
  0x21   :  { %v105_v49 = vld [vmem:[%s3670_s0 + $0x2a0] sm:$0xff]  ;;  %v438_v50 = vsel %vm149_vm0, %v117_v48, 0.0  ;;  %v492_v54 = vsel %vm149_vm0, %v135_v52, 0.0  ;;  %v441_v55 = vsel %vm149_vm0, %v118_v53, 0.0  ;;  %v42_v56 = vld [vmem:[%s3670_s0 + $0xa8] sm:$0xff]  ;;  %v72_v60 = vld [vmem:[%s3670_s0 + $0x198] sm:$0xff] }
  0x22   :  { %v402_v51 = vsel %vm149_vm0, %v105_v49, 0.0  ;;  %v25_v57 = vld [vmem:[%s3670_s0 + $0x20] sm:$0xff]  ;;  %v213_v58 = vsel %vm149_vm0, %v42_v56, 0.0  ;;  %v55_v61 = vld [vmem:[%s3670_s0 + $0x110] sm:$0xff]  ;;  %v303_v62 = vsel %vm149_vm0, %v72_v60, 0.0  ;;  %v106_v0 = vld [vmem:[%s3670_s0 + $0x2a8] sm:$0xff] }
  0x23   :  { %490 = vadd.xlane.f32.xlu1 %v489_v34  ;;  %v162_v59 = vsel %vm149_vm0, %v25_v57, 0.0  ;;  %v252_v63 = vsel %vm149_vm0, %v55_v61, 0.0  ;;  %v89_v1 = vld [vmem:[%s3670_s0 + $0x220] sm:$0xff]  ;;  %v405_v2 = vsel %vm149_vm0, %v106_v0, 0.0  ;;  %v136_v4 = vld [vmem:[%s3670_s0 + $0x398] sm:$0xff]  ;;  %v119_v5 = vld [vmem:[%s3670_s0 + $0x310] sm:$0xff] }
  0x24   :  { %487 = vadd.xlane.f32.xlu0 %v486_v35  ;;  %v354_v3 = vsel %vm149_vm0, %v89_v1, 0.0  ;;  %v495_v6 = vsel %vm149_vm0, %v136_v4, 0.0  ;;  %v444_v7 = vsel %vm149_vm0, %v119_v5, 0.0  ;;  %v43_v8 = vld [vmem:[%s3670_s0 + $0xb0] sm:$0xff]  ;;  %v26_v9 = vld [vmem:[%s3670_s0 + $0x28] sm:$0xff]  ;;  %v73_v12 = vld [vmem:[%s3670_s0 + $0x1a0] sm:$0xff] }
  0x25   :  { %v216_v10 = vsel %vm149_vm0, %v43_v8, 0.0  ;;  %v165_v11 = vsel %vm149_vm0, %v26_v9, 0.0  ;;  %v56_v13 = vld [vmem:[%s3670_s0 + $0x118] sm:$0xff]  ;;  %v306_v14 = vsel %vm149_vm0, %v73_v12, 0.0  ;;  %v107_v16 = vld [vmem:[%s3670_s0 + $0x2b0] sm:$0xff]  ;;  %v90_v17 = vld [vmem:[%s3670_s0 + $0x228] sm:$0xff] }
  0x26   :  { %v255_v15 = vsel %vm149_vm0, %v56_v13, 0.0  ;;  %v408_v18 = vsel %vm149_vm0, %v107_v16, 0.0  ;;  %v357_v19 = vsel %vm149_vm0, %v90_v17, 0.0  ;;  %v137_v20 = vld [vmem:[%s3670_s0 + $0x3a0] sm:$0xff]  ;;  %v120_v21 = vld [vmem:[%s3670_s0 + $0x318] sm:$0xff]  ;;  %v27_v25 = vld [vmem:[%s3670_s0 + $0x30] sm:$0xff] }
  0x27   :  { %211 = vadd.xlane.f32.xlu1 %v210_v38  ;;  %v498_v22 = vsel %vm149_vm0, %v137_v20, 0.0  ;;  %v447_v23 = vsel %vm149_vm0, %v120_v21, 0.0  ;;  %v44_v24 = vld [vmem:[%s3670_s0 + $0xb8] sm:$0xff]  ;;  %v168_v27 = vsel %vm149_vm0, %v27_v25, 0.0  ;;  %v74_v28 = vld [vmem:[%s3670_s0 + $0x1a8] sm:$0xff]  ;;  %v57_v29 = vld [vmem:[%s3670_s0 + $0x120] sm:$0xff] }
  0x28   :  { %160 = vadd.xlane.f32.xlu0 %v159_v39  ;;  %v219_v26 = vsel %vm149_vm0, %v44_v24, 0.0  ;;  %v309_v30 = vsel %vm149_vm0, %v74_v28, 0.0  ;;  %v258_v31 = vsel %vm149_vm0, %v57_v29, 0.0  ;;  %v108_v32 = vld [vmem:[%s3670_s0 + $0x2b8] sm:$0xff]  ;;  %v91_v33 = vld [vmem:[%s3670_s0 + $0x230] sm:$0xff]  ;;  %v138_v36 = vld [vmem:[%s3670_s0 + $0x3a8] sm:$0xff] }
  0x29   :  { %v411_v34 = vsel %vm149_vm0, %v108_v32, 0.0  ;;  %v360_v35 = vsel %vm149_vm0, %v91_v33, 0.0  ;;  %v121_v37 = vld [vmem:[%s3670_s0 + $0x320] sm:$0xff]  ;;  %v501_v38 = vsel %vm149_vm0, %v138_v36, 0.0  ;;  %v28_v41 = vld [vmem:[%s3670_s0 + $0x38] sm:$0xff]  ;;  %v75_v44 = vld [vmem:[%s3670_s0 + $0x1b0] sm:$0xff] }
  0x2a   :  { %v450_v39 = vsel %vm149_vm0, %v121_v37, 0.0  ;;  %v45_v40 = vld [vmem:[%s3670_s0 + $0xc0] sm:$0xff]  ;;  %v58_v45 = vld [vmem:[%s3670_s0 + $0x128] sm:$0xff]  ;;  %v92_v49 = vld [vmem:[%s3670_s0 + $0x238] sm:$0xff]  ;;  %vm949_vm2 = vcmask 195712   ;;  %vm956_vm3 = vcmask 261312  }
  0x2b   :  { %250 = vadd.xlane.f32.xlu1 %v249_v42  ;;  %v222_v42 = vsel %vm149_vm0, %v45_v40, 0.0  ;;  %v109_v48 = vld [vmem:[%s3670_s0 + $0x2c0] sm:$0xff]  ;;  %v139_v52 = vld [vmem:[%s3670_s0 + $0x3b0] sm:$0xff]  ;;  %v122_v53 = vld [vmem:[%s3670_s0 + $0x328] sm:$0xff]  ;;  %vm963_vm4 = vcmask 326912   ;;  %vm970_vm5 = vcmask 392512  }
  0x2c   :  { %247 = vadd.xlane.f32.xlu0 %v246_v43  ;;  %v171_v43 = vsel %vm149_vm0, %v28_v41, 0.0  ;;  %v46_v56 = vld [vmem:[%s3670_s0 + $0xc8] sm:$0xff]  ;;  %v29_v57 = vld [vmem:[%s3670_s0 + $0x40] sm:$0xff]  ;;  %v76_v60 = vld [vmem:[%s3670_s0 + $0x1b8] sm:$0xff]  ;;  %vm977_vm6 = vcmask 458112   ;;  %vm984_vm7 = vcmask 523712  }
  0x2d   :  { %v59_v61 = vld [vmem:[%s3670_s0 + $0x130] sm:$0xff]  ;;  %v110_v0 = vld [vmem:[%s3670_s0 + $0x2c8] sm:$0xff]  ;;  %v93_v1 = vld [vmem:[%s3670_s0 + $0x240] sm:$0xff]  ;;  %vm991_vm8 = vcmask 589312   ;;  %vm998_vm9 = vcmask 654912   ;;  %vm1005_vm10 = vcmask 720512  }
  0x2e   :  { %v140_v4 = vld [vmem:[%s3670_s0 + $0x3b8] sm:$0xff]  ;;  %v123_v5 = vld [vmem:[%s3670_s0 + $0x330] sm:$0xff]  ;;  %v30_v9 = vld [vmem:[%s3670_s0 + $0x48] sm:$0xff]  ;;  %vm1012_vm11 = vcmask 786112   ;;  %vm1019_vm12 = vcmask 851712   ;;  %vm1026_vm13 = vcmask 917312  }
  0x2f   :  { %352 = vadd.xlane.f32.xlu1 %v351_v46  ;;  %v312_v46 = vsel %vm149_vm0, %v75_v44, 0.0  ;;  %v47_v8 = vld [vmem:[%s3670_s0 + $0xd0] sm:$0xff]  ;;  %v77_v12 = vld [vmem:[%s3670_s0 + $0x1c0] sm:$0xff]  ;;  %v60_v13 = vld [vmem:[%s3670_s0 + $0x138] sm:$0xff]  ;;  %vm1033_vm14 = vcmask 982912   ;;  %vm1040_vm15 = vcmask 1048512  }
  0x30   :  { %301 = vadd.xlane.f32.xlu0 %v300_v47  ;;  %v261_v47 = vsel %vm149_vm0, %v58_v45, 0.0  ;;  %v267_v16 = vsel %vm149_vm0, %v60_v13, 0.0  ;;  %v125_v13 = vld [vmem:[%s3670_s0 + $0x340] sm:$0xff] }
  0x33   :  { %439 = vadd.xlane.f32.xlu1 %v438_v50  ;;  %v414_v50 = vsel %vm149_vm0, %v109_v48, 0.0 }
  0x34   :  { %403 = vadd.xlane.f32.xlu0 %v402_v51  ;;  %v363_v51 = vsel %vm149_vm0, %v92_v49, 0.0 }
  0x37   :  { %493 = vadd.xlane.f32.xlu1 %v492_v54  ;;  %v504_v54 = vsel %vm149_vm0, %v139_v52, 0.0 }
  0x38   :  { %442 = vadd.xlane.f32.xlu0 %v441_v55  ;;  %v453_v55 = vsel %vm149_vm0, %v122_v53, 0.0  ;;  %v78_v53 = vld [vmem:[%s3670_s0 + $0x1c8] sm:$0xff] }
  0x3b   :  { %214 = vadd.xlane.f32.xlu1 %v213_v58  ;;  %v225_v58 = vsel %vm149_vm0, %v46_v56, 0.0 }
  0x3c   :  { %163 = vadd.xlane.f32.xlu0 %v162_v59  ;;  %v174_v59 = vsel %vm149_vm0, %v29_v57, 0.0 }
  0x3f   :  { %304 = vadd.xlane.f32.xlu1 %v303_v62  ;;  %v315_v62 = vsel %vm149_vm0, %v76_v60, 0.0  ;;  %v321_v60 = vsel %vm149_vm0, %v78_v53, 0.0  ;;  %v113_v53 = vld [vmem:[%s3670_s0 + $0x2e0] sm:$0xff] }
  0x40   :  { %253 = vadd.xlane.f32.xlu0 %v252_v63  ;;  %v264_v63 = vsel %vm149_vm0, %v59_v61, 0.0 }
  0x43   :  { %406 = vadd.xlane.f32.xlu1 %v405_v2  ;;  %v417_v2 = vsel %vm149_vm0, %v110_v0, 0.0  ;;  %v112_v0 = vld [vmem:[%s3670_s0 + $0x2d8] sm:$0xff] }
  0x44   :  { %355 = vadd.xlane.f32.xlu0 %v354_v3  ;;  %v366_v3 = vsel %vm149_vm0, %v93_v1, 0.0  ;;  %v95_v1 = vld [vmem:[%s3670_s0 + $0x250] sm:$0xff] }
  0x47   :  { %496 = vadd.xlane.f32.xlu1 %v495_v6  ;;  %v507_v6 = vsel %vm149_vm0, %v140_v4, 0.0 }
  0x48   :  { %445 = vadd.xlane.f32.xlu0 %v444_v7  ;;  %v456_v7 = vsel %vm149_vm0, %v123_v5, 0.0 }
  0x4b   :  { %217 = vadd.xlane.f32.xlu1 %v216_v10  ;;  %v228_v10 = vsel %vm149_vm0, %v47_v8, 0.0  ;;  %v372_v8 = vsel %vm149_vm0, %v95_v1, 0.0 }
  0x4c   :  { %166 = vadd.xlane.f32.xlu0 %v165_v11  ;;  %v177_v11 = vsel %vm149_vm0, %v30_v9, 0.0 }
  0x4f   :  { %307 = vadd.xlane.f32.xlu1 %v306_v14  ;;  %v793_v14 = vlaneseq }
  0x50   :  { %256 = vadd.xlane.f32.xlu0 %v255_v15  ;;  %v318_v15 = vsel %vm149_vm0, %v77_v12, 0.0  ;;  %v142_v12 = vld [vmem:[%s3670_s0 + $0x3c8] sm:$0xff] }
  0x51   :  { %v2416_v17 = vand.u32 127, %v793_v14  ;;  %v2424_v20 = vshrl.u32 %v793_v14, 7 }
  0x53   :  { %409 = vadd.xlane.f32.xlu1 %v408_v18  ;;  %v111_v18 = vld [vmem:[%s3670_s0 + $0x2d0] sm:$0xff]  ;;  %v937_v21 = vadd.s32 4294967288, %v2416_v17  ;;  %v2437_v28 = vsub.s32 %v2416_v17, %v2424_v20  ;;  %v944_v44 = vadd.s32 4294967280, %v2416_v17 }
  0x54   :  { %358 = vadd.xlane.f32.xlu0 %v357_v19  ;;  %v94_v19 = vld [vmem:[%s3670_s0 + $0x248] sm:$0xff]  ;;  %v420_v24 = vsel %vm149_vm0, %v111_v18, 0.0 }
  0x55   :  { %v369_v25 = vsel %vm149_vm0, %v94_v19, 0.0  ;;  %v2468_v57 = vsub.s32 %v944_v44, %v2424_v20 }
  0x57   :  { %499 = vadd.xlane.f32.xlu1 %v498_v22 }
  0x58   :  { %448 = vadd.xlane.f32.xlu0 %v447_v23 }
  0x5b   :  { %220 = vadd.xlane.f32.xlu1 %v219_v26  ;;  %v141_v26 = vld [vmem:[%s3670_s0 + $0x3c0] sm:$0xff] }
  0x5c   :  { %169 = vadd.xlane.f32.xlu0 %v168_v27  ;;  %v124_v27 = vld [vmem:[%s3670_s0 + $0x338] sm:$0xff] }
  0x5f   :  { %310 = vadd.xlane.f32.xlu1 %v309_v30 }
  0x60   :  { %259 = vadd.xlane.f32.xlu0 %v258_v31  ;;  %v2440_v31 = vsub.s32 %v937_v21, %v2424_v20 }
  0x63   :  { %412 = vadd.xlane.f32.xlu1 %v411_v34  ;;  %v510_v34 = vsel %vm149_vm0, %v141_v26, 0.0 }
  0x64   :  { %361 = vadd.xlane.f32.xlu0 %v360_v35  ;;  %v459_v35 = vsel %vm149_vm0, %v124_v27, 0.0 }
  0x67   :  { %502 = vadd.xlane.f32.xlu1 %v501_v38  ;;  %v48_v38 = vld [vmem:[%s3670_s0 + $0xd8] sm:$0xff] }
  0x68   :  { %451 = vadd.xlane.f32.xlu0 %v450_v39  ;;  %v31_v39 = vld [vmem:[%s3670_s0 + $0x50] sm:$0xff] }
  0x69   :  { %v180_v48 = vsel %vm149_vm0, %v31_v39, 0.0 }
  0x6b   :  { %223 = vadd.xlane.f32.xlu1 %v222_v42 }
  0x6c   :  { %172 = vadd.xlane.f32.xlu0 %v171_v43 }
  0x6f   :  { %313 = vadd.xlane.f32.xlu1 %v312_v46 }
  0x70   :  { %262 = vadd.xlane.f32.xlu0 %v261_v47  ;;  %v231_v47 = vsel %vm149_vm0, %v48_v38, 0.0 }
  0x73   :  { %415 = vadd.xlane.f32.xlu1 %v414_v50 }
  0x74   :  { %364 = vadd.xlane.f32.xlu0 %v363_v51 }
  0x77   :  { %505 = vadd.xlane.f32.xlu1 %v504_v54  ;;  %v61_v54 = vld [vmem:[%s3670_s0 + $0x140] sm:$0xff] }
  0x78   :  { %454 = vadd.xlane.f32.xlu0 %v453_v55  ;;  %v270_v61 = vsel %vm149_vm0, %v61_v54, 0.0  ;;  %v96_v54 = vld [vmem:[%s3670_s0 + $0x258] sm:$0xff] }
  0x7b   :  { %226 = vadd.xlane.f32.xlu1 %v225_v58 }
  0x7c   :  { %175 = vadd.xlane.f32.xlu0 %v174_v59 }
  0x7f   :  { %316 = vadd.xlane.f32.xlu1 %v315_v62 }
  0x80   :  { %265 = vadd.xlane.f32.xlu0 %v264_v63 }
  0x83   :  { %418 = vadd.xlane.f32.xlu1 %v417_v2  ;;  %v951_v2 = vadd.s32 4294967272, %v2416_v17 }
  0x84   :  { %367 = vadd.xlane.f32.xlu0 %v366_v3 }
  0x85   :  { %v2491_v14 = vsub.s32 %v951_v2, %v2424_v20 }
  0x87   :  { %508 = vadd.xlane.f32.xlu1 %v507_v6 }
  0x88   :  { %457 = vadd.xlane.f32.xlu0 %v456_v7  ;;  %v423_v7 = vsel %vm149_vm0, %v112_v0, 0.0 }
  0x8b   :  { %229 = vadd.xlane.f32.xlu1 %v228_v10 }
  0x8c   :  { %178 = vadd.xlane.f32.xlu0 %v177_v11 }
  0x8f   :  { %319 = vadd.xlane.f32.xlu1 %v318_v15 }
  0x90   :  { %268 = vadd.xlane.f32.xlu0 %v267_v16  ;;  %v392_v22 = vpop.xlane.xlu1 %391 }
  0x91   :  { %v200_v23 = vpop.xlane.xlu0 %199  ;;  %v615_v29 = vmul.f32 0.0625, %v392_v22  ;;  %v513_v22 = vsel %vm149_vm0, %v142_v12, 0.0 }
  0x92   :  { %v551_v30 = vmul.f32 0.0625, %v200_v23  ;;  %v462_v23 = vsel %vm149_vm0, %v125_v13, 0.0 }
  0x93   :  { %421 = vadd.xlane.f32.xlu1 %v420_v24  ;;  %v1361_v40 = vrot.slane %v615_v29, %v2437_v28  ;;  %v49_v29 = vld [vmem:[%s3670_s0 + $0xe0] sm:$0xff] }
  0x94   :  { %370 = vadd.xlane.f32.xlu0 %v369_v25  ;;  %v395_v32 = vpop.xlane.xlu1 %394  ;;  %v1045_v41 = vrot.slane %v551_v30, %v2437_v28  ;;  %v32_v30 = vld [vmem:[%s3670_s0 + $0x58] sm:$0xff] }
  0x95   :  { %v203_v33 = vpop.xlane.xlu0 %202  ;;  %v616_v36 = vmul.f32 0.0625, %v395_v32 }
  0x96   :  { %v552_v37 = vmul.f32 0.0625, %v203_v33 }
  0x97   :  { %v1365_v42 = vrot.slane %v616_v36, %v2440_v31  ;;  %511 = vadd.xlane.f32.xlu1 %v510_v34  ;;  %v234_v36 = vsel %vm149_vm0, %v49_v29, 0.0 }
  0x98   :  { %v1049_v43 = vrot.slane %v552_v37, %v2440_v31  ;;  %460 = vadd.xlane.f32.xlu0 %v459_v35  ;;  %v155_v45 = vpop.xlane.xlu1 %154  ;;  %v183_v37 = vsel %vm149_vm0, %v32_v30, 0.0 }
  0x99   :  { %v152_v46 = vpop.xlane.xlu0 %151  ;;  %v1366_v49 = vsel %vm942_vm1, %v1365_v42, %v1361_v40  ;;  %v536_v51 = vmul.f32 0.0625, %v155_v45  ;;  %v79_v42 = vld [vmem:[%s3670_s0 + $0x1d0] sm:$0xff] }
  0x9a   :  { %v1050_v50 = vsel %vm942_vm1, %v1049_v43, %v1045_v41  ;;  %v535_v52 = vmul.f32 0.0625, %v152_v46  ;;  %v62_v43 = vld [vmem:[%s3670_s0 + $0x148] sm:$0xff] }
  0x9b   :  { %v941_v55 = vrot.slane %v536_v51, %v2440_v31  ;;  %232 = vadd.xlane.f32.xlu1 %v231_v47 }
  0x9c   :  { %v936_v56 = vrot.slane %v535_v52, %v2437_v28  ;;  %181 = vadd.xlane.f32.xlu0 %v180_v48  ;;  %v344_v58 = vpop.xlane.xlu1 %343  ;;  %v324_v48 = vsel %vm149_vm0, %v79_v42, 0.0 }
  0x9d   :  { %v206_v59 = vpop.xlane.xlu0 %205  ;;  %v599_v3 = vmul.f32 0.0625, %v344_v58  ;;  %v958_v58 = vadd.s32 4294967264, %v2416_v17 }
  0x9e   :  { %v943_v62 = vsel %vm942_vm1, %v941_v55, %v936_v56  ;;  %v553_v63 = vmul.f32 0.0625, %v206_v59 }
  0x9f   :  { %322 = vadd.xlane.f32.xlu1 %v321_v60  ;;  %v1282_v15 = vrot.slane %v599_v3, %v2437_v28  ;;  %v143_v3 = vld [vmem:[%s3670_s0 + $0x3d0] sm:$0xff] }
  0xa0   :  { %v1054_v4 = vrot.slane %v553_v63, %v2468_v57  ;;  %271 = vadd.xlane.f32.xlu0 %v270_v61  ;;  %v398_v5 = vpop.xlane.xlu1 %397  ;;  %v426_v61 = vsel %vm149_vm0, %v113_v53, 0.0  ;;  %v664_v53 = vld [vmem:[%s3671_s1 + $0x8] sm:$0xff] }
  0xa1   :  { %v347_v6 = vpop.xlane.xlu0 %346  ;;  %v617_v10 = vmul.f32 0.0625, %v398_v5 }
  0xa2   :  { %v1055_v9 = vsel %vm949_vm2, %v1054_v4, %v1050_v50  ;;  %v600_v11 = vmul.f32 0.0625, %v347_v6  ;;  %v126_v4 = vld [vmem:[%s3670_s0 + $0x348] sm:$0xff] }
  0xa3   :  { %v1370_v16 = vrot.slane %v617_v10, %v2468_v57  ;;  %424 = vadd.xlane.f32.xlu1 %v423_v7  ;;  %v2549_v7 = vsub.s32 %v958_v58, %v2424_v20  ;;  %v516_v10 = vsel %vm149_vm0, %v143_v3, 0.0 }
  0xa4   :  { %v1286_v18 = vrot.slane %v600_v11, %v2440_v31  ;;  %373 = vadd.xlane.f32.xlu0 %v372_v8  ;;  %v209_v19 = vpop.xlane.xlu1 %208  ;;  %v465_v11 = vsel %vm149_vm0, %v126_v4, 0.0 }
  0xa5   :  { %v158_v21 = vpop.xlane.xlu0 %157  ;;  %v1371_v24 = vsel %vm949_vm2, %v1370_v16, %v1366_v49  ;;  %v554_v26 = vmul.f32 0.0625, %v209_v19  ;;  %v273_v49 = vsel %vm149_vm0, %v62_v43, 0.0  ;;  %v50_v16 = vld [vmem:[%s3670_s0 + $0xe8] sm:$0xff] }
  0xa6   :  { %v1287_v25 = vsel %vm942_vm1, %v1286_v18, %v1282_v15  ;;  %v537_v27 = vmul.f32 0.0625, %v158_v21  ;;  %v33_v18 = vld [vmem:[%s3670_s0 + $0x60] sm:$0xff]  ;;  %v114_v43 = vld [vmem:[%s3670_s0 + $0x2e8] sm:$0xff] }
  0xa7   :  { %v1059_v32 = vrot.slane %v554_v26, %v2491_v14  ;;  %514 = vadd.xlane.f32.xlu1 %v513_v22 }
  0xa8   :  { %v948_v33 = vrot.slane %v537_v27, %v2468_v57  ;;  %463 = vadd.xlane.f32.xlu0 %v462_v23  ;;  %v299_v34 = vpop.xlane.xlu1 %298 }
  0xa9   :  { %v296_v35 = vpop.xlane.xlu0 %295  ;;  %v1060_v38 = vsel %vm956_vm3, %v1059_v32, %v1055_v9  ;;  %v584_v40 = vmul.f32 0.0625, %v299_v34  ;;  %v80_v32 = vld [vmem:[%s3670_s0 + $0x1d8] sm:$0xff] }
  0xaa   :  { %v950_v39 = vsel %vm949_vm2, %v948_v33, %v943_v62  ;;  %v583_v41 = vmul.f32 0.0625, %v296_v35  ;;  %v375_v62 = vsel %vm149_vm0, %v96_v54, 0.0  ;;  %v63_v33 = vld [vmem:[%s3670_s0 + $0x150] sm:$0xff]  ;;  %v666_v54 = vld [vmem:[%s3671_s1 + $0x18] sm:$0xff] }
  0xab   :  { %v1207_v44 = vrot.slane %v584_v40, %v2440_v31  ;;  %235 = vadd.xlane.f32.xlu1 %v234_v36 }
  0xac   :  { %v1203_v45 = vrot.slane %v583_v41, %v2437_v28  ;;  %184 = vadd.xlane.f32.xlu0 %v183_v37  ;;  %v401_v46 = vpop.xlane.xlu1 %400 }
  0xad   :  { %v350_v47 = vpop.xlane.xlu0 %349  ;;  %v618_v51 = vmul.f32 0.0625, %v401_v46 }
  0xae   :  { %v2523_v50 = vsel %vm942_vm1, %v1207_v44, %v1203_v45  ;;  %v601_v52 = vmul.f32 0.0625, %v350_v47  ;;  %v97_v44 = vld [vmem:[%s3670_s0 + $0x260] sm:$0xff] }
  0xaf   :  { %v1375_v55 = vrot.slane %v618_v51, %v2491_v14  ;;  %325 = vadd.xlane.f32.xlu1 %v324_v48  ;;  %v378_v51 = vsel %vm149_vm0, %v97_v44, 0.0 }
  0xb0   :  { %v1291_v56 = vrot.slane %v601_v52, %v2468_v57  ;;  %274 = vadd.xlane.f32.xlu0 %v273_v49  ;;  %v491_v59 = vpop.xlane.xlu1 %490  ;;  %v429_v49 = vsel %vm149_vm0, %v114_v43, 0.0  ;;  %v144_v52 = vld [vmem:[%s3670_s0 + $0x3d8] sm:$0xff] }
  0xb1   :  { %v488_v60 = vpop.xlane.xlu0 %487  ;;  %v2537_v63 = vsel %vm956_vm3, %v1375_v55, %v1371_v24  ;;  %v648_v1 = vmul.f32 0.0625, %v491_v59  ;;  %v237_v24 = vsel %vm149_vm0, %v50_v16, 0.0  ;;  %v127_v59 = vld [vmem:[%s3670_s0 + $0x350] sm:$0xff]  ;;  %v34_v16 = vld [vmem:[%s3670_s0 + $0x68] sm:$0xff] }
  0xb2   :  { %v1292_v0 = vsel %vm949_vm2, %v1291_v56, %v1287_v25  ;;  %v647_v2 = vmul.f32 0.0625, %v488_v60  ;;  %v186_v25 = vsel %vm149_vm0, %v33_v18, 0.0  ;;  %v663_v60 = vld [vmem:[%s3671_s1] sm:$0xff] }
  0xb3   :  { %v1523_v5 = vrot.slane %v648_v1, %v2440_v31  ;;  %427 = vadd.xlane.f32.xlu1 %v426_v61  ;;  %v665_v61 = vld [vmem:[%s3671_s1 + $0x10] sm:$0xff] }
  0xb4   :  { %v1519_v6 = vrot.slane %v647_v2, %v2437_v28  ;;  %376 = vadd.xlane.f32.xlu0 %v375_v62  ;;  %v212_v8 = vpop.xlane.xlu1 %211  ;;  %v965_v62 = vadd.s32 4294967256, %v2416_v17  ;;  %v1910_v1 = vpack.c.bf16 %v665_v61, %v663_v60  ;;  %v98_v61 = vld [vmem:[%s3670_s0 + $0x268] sm:$0xff] }
  0xb5   :  { %v161_v9 = vpop.xlane.xlu0 %160  ;;  %v555_v13 = vmul.f32 0.0625, %v212_v8  ;;  %v51_v8 = vld [vmem:[%s3670_s0 + $0xf0] sm:$0xff] }
  0xb6   :  { %v2554_v12 = vsel %vm942_vm1, %v1523_v5, %v1519_v6  ;;  %v538_v15 = vmul.f32 0.0625, %v161_v9  ;;  %v519_v5 = vsel %vm149_vm0, %v144_v52, 0.0  ;;  %v468_v6 = vsel %vm149_vm0, %v127_v59, 0.0  ;;  %v668_v9 = vld [vmem:[%s3671_s1 + $0x28] sm:$0xff] }
  0xb7   :  { %v1064_v19 = vrot.slane %v555_v13, %v2549_v7  ;;  %517 = vadd.xlane.f32.xlu1 %v516_v10  ;;  %v670_v10 = vld [vmem:[%s3671_s1 + $0x38] sm:$0xff]  ;;  %v676_v52 = vld [vmem:[%s3671_s1 + $0x68] sm:$0xff] }
  0xb8   :  { %v955_v21 = vrot.slane %v538_v15, %v2491_v14  ;;  %466 = vadd.xlane.f32.xlu0 %v465_v11  ;;  %v251_v22 = vpop.xlane.xlu1 %250  ;;  %v1912_v18 = vpack.c.bf16 %v670_v10, %v668_v9  ;;  %v680_v9 = vld [vmem:[%s3671_s1 + $0x88] sm:$0xff]  ;;  %v682_v10 = vld [vmem:[%s3671_s1 + $0x98] sm:$0xff] }
  0xb9   :  { %v248_v23 = vpop.xlane.xlu0 %247  ;;  %v2567_v26 = vsel %vm963_vm4, %v1064_v19, %v1060_v38  ;;  %v568_v29 = vmul.f32 0.0625, %v251_v22  ;;  %v327_v38 = vsel %vm149_vm0, %v80_v32, 0.0  ;;  %v667_v19 = vld [vmem:[%s3671_s1 + $0x20] sm:$0xff]  ;;  %v2647_v22 = vsub.s32 %v965_v62, %v2424_v20 }
  0xba   :  { %v2570_v27 = vsel %vm956_vm3, %v955_v21, %v950_v39  ;;  %v567_v30 = vmul.f32 0.0625, %v248_v23  ;;  %v276_v39 = vsel %vm149_vm0, %v63_v33, 0.0  ;;  %v669_v21 = vld [vmem:[%s3671_s1 + $0x30] sm:$0xff]  ;;  %v240_v32 = vsel %vm149_vm0, %v51_v8, 0.0  ;;  %v675_v62 = vld [vmem:[%s3671_s1 + $0x60] sm:$0xff] }
  0xbb   :  { %v1128_v34 = vrot.slane %v568_v29, %v2440_v31  ;;  %238 = vadd.xlane.f32.xlu1 %v237_v24  ;;  %v189_v33 = vsel %vm149_vm0, %v34_v16, 0.0  ;;  %v381_v8 = vsel %vm149_vm0, %v98_v61, 0.0 }
  0xbc   :  { %v1124_v35 = vrot.slane %v567_v30, %v2437_v28  ;;  %187 = vadd.xlane.f32.xlu0 %v186_v25  ;;  %v353_v36 = vpop.xlane.xlu1 %352 }
  0xbd   :  { %v302_v37 = vpop.xlane.xlu0 %301  ;;  %v602_v41 = vmul.f32 0.0625, %v353_v36 }
  0xbe   :  { %v2583_v40 = vsel %vm942_vm1, %v1128_v34, %v1124_v35  ;;  %v585_v42 = vmul.f32 0.0625, %v302_v37  ;;  %v81_v34 = vld [vmem:[%s3670_s0 + $0x1e0] sm:$0xff] }
  0xbf   :  { %v1296_v45 = vrot.slane %v602_v41, %v2491_v14  ;;  %328 = vadd.xlane.f32.xlu1 %v327_v38  ;;  %v671_v41 = vld [vmem:[%s3671_s1 + $0x40] sm:$0xff] }
  0xc0   :  { %v1212_v46 = vrot.slane %v585_v42, %v2468_v57  ;;  %277 = vadd.xlane.f32.xlu0 %v276_v39  ;;  %v440_v47 = vpop.xlane.xlu1 %439  ;;  %v64_v39 = vld [vmem:[%s3670_s0 + $0x158] sm:$0xff]  ;;  %v673_v42 = vld [vmem:[%s3671_s1 + $0x50] sm:$0xff] }
  0xc1   :  { %v404_v48 = vpop.xlane.xlu0 %403  ;;  %v2605_v55 = vsel %vm956_vm3, %v1296_v45, %v1292_v0  ;;  %v1908_v0 = vpack.c.bf16 %v666_v54, %v664_v53  ;;  %v631_v2 = vmul.f32 0.0625, %v440_v47  ;;  %v1918_v43 = vpack.c.bf16 %v673_v42, %v671_v41  ;;  %v678_v53 = vld [vmem:[%s3671_s1 + $0x78] sm:$0xff]  ;;  %v684_v42 = vld [vmem:[%s3671_s1 + $0xa8] sm:$0xff] }
  0xc2   :  { %v2609_v56 = vsel %vm949_vm2, %v1212_v46, %v2523_v50  ;;  %v619_v58 = vmul.f32 0.0625, %v404_v48  ;;  %v330_v48 = vsel %vm149_vm0, %v81_v34, 0.0  ;;  %v52_v34 = vld [vmem:[%s3670_s0 + $0xf8] sm:$0xff] }
  0xc3   :  { %430 = vadd.xlane.f32.xlu1 %v429_v49  ;;  %1909 = vmatprep.subr.bf16.mxu1 %v1908_v0  ;;  %v1440_v23 = vrot.slane %v631_v2, %v2437_v28  ;;  %v672_v28 = vld [vmem:[%s3671_s1 + $0x48] sm:$0xff]  ;;  %v279_v49 = vsel %vm149_vm0, %v64_v39, 0.0  ;;  %v1920_v0 = vpack.c.bf16 %v678_v53, %v676_v52 }
  0xc4   :  { %v1380_v50 = vrot.slane %v619_v58, %v2549_v7  ;;  %379 = vadd.xlane.f32.xlu0 %v378_v51  ;;  %v494_v3 = vpop.xlane.xlu1 %493  ;;  %1911 = vmatpush1.bf16.msra.mxu1 %v1910_v1  ;;  %v115_v51 = vld [vmem:[%s3670_s0 + $0x2f0] sm:$0xff] }
  0xc5   :  { %v443_v4 = vpop.xlane.xlu0 %442  ;;  %v649_v13 = vmul.f32 0.0625, %v494_v3  ;;  %1913 = vmatprep.subr.bf16.mxu1 %v1912_v18  ;;  %v128_v3 = vld [vmem:[%s3670_s0 + $0x358] sm:$0xff] }
  0xc6   :  { %v2635_v11 = vsel %vm963_vm4, %v1380_v50, %v2537_v63  ;;  %v632_v15 = vmul.f32 0.0625, %v443_v4  ;;  %v1914_v63 = vpack.c.bf16 %v669_v21, %v667_v19  ;;  %v145_v50 = vld [vmem:[%s3670_s0 + $0x3e0] sm:$0xff]  ;;  %v730_v21 = vld [vmem:[%s3671_s1 + $0x218] sm:$0xff]  ;;  %v471_v41 = vsel %vm149_vm0, %v128_v3, 0.0 }
  0xc7   :  { %v1528_v24 = vrot.slane %v649_v13, %v2468_v57  ;;  %520 = vadd.xlane.f32.xlu1 %v519_v5  ;;  %v728_v13 = vld [vmem:[%s3671_s1 + $0x208] sm:$0xff]  ;;  %v522_v39 = vsel %vm149_vm0, %v145_v50, 0.0  ;;  %v243_v50 = vsel %vm149_vm0, %v52_v34, 0.0 }
  0xc8   :  { %v1444_v25 = vrot.slane %v632_v15, %v2440_v31  ;;  %469 = vadd.xlane.f32.xlu0 %v468_v6  ;;  %v215_v29 = vpop.xlane.xlu1 %214  ;;  %v674_v31 = vld [vmem:[%s3671_s1 + $0x58] sm:$0xff]  ;;  %1915 = vmatpush1.bf16.msra.mxu1 %v1914_v63  ;;  %v432_v6 = vsel %vm149_vm0, %v115_v51, 0.0  ;;  %v679_v63 = vld [vmem:[%s3671_s1 + $0x80] sm:$0xff] }
  0xc9   :  { %v164_v30 = vpop.xlane.xlu0 %163  ;;  %v2665_v35 = vsel %vm949_vm2, %v1528_v24, %v2554_v12  ;;  %v556_v37 = vmul.f32 0.0625, %v215_v29  ;;  %v1916_v12 = vpack.c.bf16 %v674_v31, %v672_v28  ;;  %v1924_v24 = vpack.c.bf16 %v682_v10, %v680_v9  ;;  %v727_v29 = vld [vmem:[%s3671_s1 + $0x200] sm:$0xff]  ;;  %v35_v28 = vld [vmem:[%s3670_s0 + $0x70] sm:$0xff] }
  0xca   :  { %v2668_v36 = vsel %vm942_vm1, %v1444_v25, %v1440_v23  ;;  %v539_v38 = vmul.f32 0.0625, %v164_v30  ;;  %v972_v23 = vadd.s32 4294967248, %v2416_v17  ;;  %v729_v30 = vld [vmem:[%s3671_s1 + $0x210] sm:$0xff]  ;;  %v192_v3 = vsel %vm149_vm0, %v35_v28, 0.0  ;;  %v692_v28 = vld [vmem:[%s3671_s1 + $0xe8] sm:$0xff] }
  0xcb   :  { %v1069_v44 = vrot.slane %v556_v37, %v2647_v22  ;;  %241 = vadd.xlane.f32.xlu1 %v240_v32  ;;  %1917 = vmatprep.subr.bf16.mxu1 %v1916_v12  ;;  %v1974_v31 = vpack.c.bf16 %v729_v30, %v727_v29  ;;  %v686_v12 = vld [vmem:[%s3671_s1 + $0xb8] sm:$0xff] }
  0xcc   :  { %v962_v45 = vrot.slane %v539_v38, %v2549_v7  ;;  %190 = vadd.xlane.f32.xlu0 %v189_v33  ;;  %v305_v46 = vpop.xlane.xlu1 %304  ;;  %1919 = vmatpush1.bf16.msra.mxu1 %v1918_v43  ;;  %v732_v43 = vld [vmem:[%s3671_s1 + $0x228] sm:$0xff]  ;;  %v2789_v51 = vsub.s32 %v972_v23, %v2424_v20 }
  0xcd   :  { %v254_v47 = vpop.xlane.xlu0 %253  ;;  %v2694_v54 = vsel %vm970_vm5, %v1069_v44, %v2567_v26  ;;  %v586_v59 = vmul.f32 0.0625, %v305_v46  ;;  %v677_v26 = vld [vmem:[%s3671_s1 + $0x70] sm:$0xff]  ;;  %1921 = vmatprep.subr.bf16.mxu1 %v1920_v0  ;;  %v65_v0 = vld [vmem:[%s3670_s0 + $0x160] sm:$0xff] }
  0xce   :  { %v2698_v58 = vsel %vm963_vm4, %v962_v45, %v2570_v27  ;;  %v569_v60 = vmul.f32 0.0625, %v254_v47  ;;  %v1922_v1 = vpack.c.bf16 %v677_v26, %v675_v62  ;;  %v82_v26 = vld [vmem:[%s3670_s0 + $0x1e8] sm:$0xff]  ;;  %v282_v34 = vsel %vm149_vm0, %v65_v0, 0.0 }
  0xcf   :  { %v1217_v27 = vrot.slane %v586_v59, %v2491_v14  ;;  %331 = vadd.xlane.f32.xlu1 %v330_v48  ;;  %v734_v48 = vld [vmem:[%s3671_s1 + $0x238] sm:$0xff]  ;;  %v731_v59 = vld [vmem:[%s3671_s1 + $0x220] sm:$0xff]  ;;  %v696_v0 = vld [vmem:[%s3671_s1 + $0x108] sm:$0xff] }
  0xd0   :  { %v1133_v2 = vrot.slane %v569_v60, %v2468_v57  ;;  %280 = vadd.xlane.f32.xlu0 %v279_v49  ;;  %v407_v4 = vpop.xlane.xlu1 %406  ;;  %1923 = vmatpush1.bf16.msra.mxu1 %v1922_v1  ;;  %v683_v49 = vld [vmem:[%s3671_s1 + $0xa0] sm:$0xff]  ;;  %v1976_v52 = vpack.c.bf16 %v734_v48, %v732_v43  ;;  %v733_v60 = vld [vmem:[%s3671_s1 + $0x230] sm:$0xff] }
  0xd1   :  { %v356_v5 = vpop.xlane.xlu0 %355  ;;  %v2730_v15 = vsel %vm956_vm3, %v1217_v27, %v2609_v56  ;;  %v620_v18 = vmul.f32 0.0625, %v407_v4  ;;  %v681_v56 = vld [vmem:[%s3671_s1 + $0x90] sm:$0xff]  ;;  %1925 = vmatprep.subr.bf16.mxu1 %v1924_v24  ;;  %v1978_v1 = vpack.c.bf16 %v733_v60, %v731_v59  ;;  %v690_v4 = vld [vmem:[%s3671_s1 + $0xd8] sm:$0xff]  ;;  %v691_v43 = vld [vmem:[%s3671_s1 + $0xe0] sm:$0xff] }
  0xd2   :  { %v2734_v16 = vsel %vm949_vm2, %v1133_v2, %v2583_v40  ;;  %v603_v19 = vmul.f32 0.0625, %v356_v5  ;;  %v1972_v40 = vpack.c.bf16 %v730_v21, %v728_v13  ;;  %v1926_v25 = vpack.c.bf16 %v681_v56, %v679_v63  ;;  %v736_v5 = vld [vmem:[%s3671_s1 + $0x248] sm:$0xff]  ;;  %v738_v13 = vld [vmem:[%s3671_s1 + $0x258] sm:$0xff]  ;;  %v735_v63 = vld [vmem:[%s3671_s1 + $0x240] sm:$0xff] }
  0xd3   :  { %v1385_v32 = vrot.slane %v620_v18, %v2647_v22  ;;  %433 = vadd.xlane.f32.xlu1 %v432_v6  ;;  %v687_v18 = vld [vmem:[%s3671_s1 + $0xc0] sm:$0xff]  ;;  %v737_v56 = vld [vmem:[%s3671_s1 + $0x250] sm:$0xff] }
  0xd4   :  { %v1301_v33 = vrot.slane %v603_v19, %v2549_v7  ;;  %382 = vadd.xlane.f32.xlu0 %v381_v8  ;;  %v497_v37 = vpop.xlane.xlu1 %496  ;;  %1973 = vmatprep.subr.bf16.mxu0 %v1972_v40  ;;  %v116_v40 = vld [vmem:[%s3670_s0 + $0x2f8] sm:$0xff]  ;;  %v1982_v29 = vpack.c.bf16 %v737_v56, %v735_v63  ;;  %v739_v48 = vld [vmem:[%s3671_s1 + $0x260] sm:$0xff] }
  0xd5   :  { %v446_v38 = vpop.xlane.xlu0 %445  ;;  %v2773_v44 = vsel %vm970_vm5, %v1385_v32, %v2635_v11  ;;  %v650_v46 = vmul.f32 0.0625, %v497_v37  ;;  %1927 = vmatpush1.bf16.msra.mxu1 %v1926_v25  ;;  %1975 = vmatpush1.bf16.msra.mxu0 %v1974_v31  ;;  %v685_v11 = vld [vmem:[%s3671_s1 + $0xb0] sm:$0xff]  ;;  %v694_v31 = vld [vmem:[%s3671_s1 + $0xf8] sm:$0xff]  ;;  %v740_v37 = vld [vmem:[%s3671_s1 + $0x268] sm:$0xff] }
  0xd6   :  { %v2777_v45 = vsel %vm963_vm4, %v1301_v33, %v2605_v55  ;;  %v633_v47 = vmul.f32 0.0625, %v446_v38  ;;  %v1928_v55 = vpack.c.bf16 %v686_v12, %v684_v42  ;;  %v1930_v53 = vpack.c.bf16 %v685_v11, %v683_v49  ;;  %1977 = vmatprep.subr.bf16.mxu0 %v1976_v52  ;;  %v99_v25 = vld [vmem:[%s3670_s0 + $0x270] sm:$0xff]  ;;  %v742_v12 = vld [vmem:[%s3671_s1 + $0x278] sm:$0xff]  ;;  %v146_v52 = vld [vmem:[%s3670_s0 + $0x3e8] sm:$0xff] }
  0xd7   :  { %v1533_v61 = vrot.slane %v650_v46, %v2491_v14  ;;  %523 = vadd.xlane.f32.xlu1 %v522_v39  ;;  %v333_v33 = vsel %vm149_vm0, %v82_v26, 0.0  ;;  %v1936_v46 = vpack.c.bf16 %v694_v31, %v692_v28  ;;  %v741_v49 = vld [vmem:[%s3671_s1 + $0x270] sm:$0xff]  ;;  %v384_v26 = vsel %vm149_vm0, %v99_v25, 0.0  ;;  %v36_v63 = vld [vmem:[%s3670_s0 + $0x78] sm:$0xff] }
  0xd8   :  { %v1449_v62 = vrot.slane %v633_v47, %v2468_v57  ;;  %472 = vadd.xlane.f32.xlu0 %v471_v41  ;;  %v218_v27 = vpop.xlane.xlu1 %217  ;;  %1929 = vmatprep.subr.bf16.mxu1 %v1928_v55  ;;  %v688_v57 = vld [vmem:[%s3671_s1 + $0xc8] sm:$0xff]  ;;  %v1984_v47 = vpack.c.bf16 %v742_v12, %v740_v37  ;;  %v1986_v59 = vpack.c.bf16 %v741_v49, %v739_v48  ;;  %v750_v37 = vld [vmem:[%s3671_s1 + $0x2b8] sm:$0xff]  ;;  %v83_v49 = vld [vmem:[%s3670_s0 + $0x1f0] sm:$0xff] }
  0xd9   :  { %v167_v2 = vpop.xlane.xlu0 %166  ;;  %v2818_v6 = vsel %vm956_vm3, %v1533_v61, %v2665_v35  ;;  %v557_v9 = vmul.f32 0.0625, %v218_v27  ;;  %1931 = vmatpush1.bf16.msra.mxu1 %v1930_v53  ;;  %1979 = vmatpush1.bf16.msra.mxu0 %v1978_v1  ;;  %v689_v35 = vld [vmem:[%s3671_s1 + $0xd0] sm:$0xff]  ;;  %v1932_v19 = vpack.c.bf16 %v690_v4, %v688_v57  ;;  %v129_v53 = vld [vmem:[%s3670_s0 + $0x360] sm:$0xff]  ;;  %v698_v1 = vld [vmem:[%s3671_s1 + $0x118] sm:$0xff] }
  0xda   :  { %v2822_v8 = vsel %vm949_vm2, %v1449_v62, %v2668_v36  ;;  %v540_v10 = vmul.f32 0.0625, %v167_v2  ;;  %v1980_v36 = vpack.c.bf16 %v738_v13, %v736_v5  ;;  %v1934_v21 = vpack.c.bf16 %v689_v35, %v687_v18  ;;  %v744_v27 = vld [vmem:[%s3671_s1 + $0x288] sm:$0xff]  ;;  %v746_v4 = vld [vmem:[%s3671_s1 + $0x298] sm:$0xff]  ;;  %v695_v5 = vld [vmem:[%s3671_s1 + $0x100] sm:$0xff] }
  0xdb   :  { %v1074_v23 = vrot.slane %v557_v9, %v2789_v51  ;;  %244 = vadd.xlane.f32.xlu1 %v243_v50  ;;  %1933 = vmatprep.subr.bf16.mxu1 %v1932_v19  ;;  %v435_v62 = vsel %vm149_vm0, %v116_v40, 0.0  ;;  %v979_v9 = vadd.s32 4294967240, %v2416_v17  ;;  %v743_v18 = vld [vmem:[%s3671_s1 + $0x280] sm:$0xff]  ;;  %v745_v35 = vld [vmem:[%s3671_s1 + $0x290] sm:$0xff]  ;;  %v525_v40 = vsel %vm149_vm0, %v146_v52, 0.0  ;;  %v100_v48 = vld [vmem:[%s3670_s0 + $0x278] sm:$0xff] }
  0xdc   :  { %v969_v24 = vrot.slane %v540_v10, %v2647_v22  ;;  %193 = vadd.xlane.f32.xlu0 %v192_v3  ;;  %v308_v30 = vpop.xlane.xlu1 %307  ;;  %1981 = vmatprep.subr.bf16.mxu0 %v1980_v36  ;;  %v1988_v10 = vpack.c.bf16 %v746_v4, %v744_v27  ;;  %v1990_v56 = vpack.c.bf16 %v745_v35, %v743_v18  ;;  %v474_v25 = vsel %vm149_vm0, %v129_v53, 0.0  ;;  %v754_v27 = vld [vmem:[%s3671_s1 + $0x2d8] sm:$0xff] }
  0xdd   :  { %v257_v32 = vpop.xlane.xlu0 %256  ;;  %v2860_v38 = vsel %vm977_vm6, %v1074_v23, %v2694_v54  ;;  %v587_v41 = vmul.f32 0.0625, %v308_v30  ;;  %1935 = vmatpush1.bf16.msra.mxu1 %v1934_v21  ;;  %1983 = vmatpush1.bf16.msra.mxu0 %v1982_v29  ;;  %v693_v54 = vld [vmem:[%s3671_s1 + $0xf0] sm:$0xff]  ;;  %v66_v21 = vld [vmem:[%s3670_s0 + $0x168] sm:$0xff]  ;;  %v702_v30 = vld [vmem:[%s3671_s1 + $0x138] sm:$0xff] }
  0xde   :  { %v2864_v39 = vsel %vm970_vm5, %v969_v24, %v2698_v58  ;;  %v570_v42 = vmul.f32 0.0625, %v257_v32  ;;  %v1938_v58 = vpack.c.bf16 %v693_v54, %v691_v43  ;;  %1937 = vmatprep.subr.bf16.mxu1 %v1936_v46  ;;  %1985 = vmatprep.subr.bf16.mxu0 %v1984_v47  ;;  %v700_v29 = vld [vmem:[%s3671_s1 + $0x128] sm:$0xff]  ;;  %v747_v54 = vld [vmem:[%s3671_s1 + $0x2a0] sm:$0xff]  ;;  %v749_v46 = vld [vmem:[%s3671_s1 + $0x2b0] sm:$0xff]  ;;  %v285_v53 = vsel %vm149_vm0, %v66_v21, 0.0 }
  0xdf   :  { %v1222_v11 = vrot.slane %v587_v41, %v2549_v7  ;;  %334 = vadd.xlane.f32.xlu1 %v333_v33  ;;  %v748_v32 = vld [vmem:[%s3671_s1 + $0x2a8] sm:$0xff]  ;;  %v699_v41 = vld [vmem:[%s3671_s1 + $0x120] sm:$0xff]  ;;  %v336_v21 = vsel %vm149_vm0, %v83_v49, 0.0 }
  0xe0   :  { %v1138_v55 = vrot.slane %v570_v42, %v2491_v14  ;;  %283 = vadd.xlane.f32.xlu0 %v282_v34  ;;  %v410_v60 = vpop.xlane.xlu1 %409  ;;  %v2961_v42 = vsub.s32 %v979_v9, %v2424_v20  ;;  %v1992_v12 = vpack.c.bf16 %v750_v37, %v748_v32  ;;  %v707_v32 = vld [vmem:[%s3671_s1 + $0x160] sm:$0xff]  ;;  %v712_v49 = vld [vmem:[%s3671_s1 + $0x188] sm:$0xff] }
  0xe1   :  { %v359_v61 = vpop.xlane.xlu0 %358  ;;  %v2902_v2 = vsel %vm963_vm4, %v1222_v11, %v2730_v15  ;;  %v621_v3 = vmul.f32 0.0625, %v410_v60  ;;  %1939 = vmatpush1.bf16.msra.mxu1 %v1938_v58  ;;  %1987 = vmatpush1.bf16.msra.mxu0 %v1986_v59  ;;  %v697_v15 = vld [vmem:[%s3671_s1 + $0x110] sm:$0xff]  ;;  %v1994_v11 = vpack.c.bf16 %v749_v46, %v747_v54  ;;  %v195_v59 = vsel %vm149_vm0, %v36_v63, 0.0  ;;  %v706_v60 = vld [vmem:[%s3671_s1 + $0x158] sm:$0xff]  ;;  %v708_v63 = vld [vmem:[%s3671_s1 + $0x168] sm:$0xff] }
  0xe2   :  { %v2906_v50 = vsel %vm956_vm3, %v1138_v55, %v2734_v16  ;;  %v604_v57 = vmul.f32 0.0625, %v359_v61  ;;  %v1940_v16 = vpack.c.bf16 %v698_v1, %v696_v0  ;;  %v1942_v13 = vpack.c.bf16 %v697_v15, %v695_v5  ;;  %1989 = vmatprep.subr.bf16.mxu0 %v1988_v10  ;;  %v752_v61 = vld [vmem:[%s3671_s1 + $0x2c8] sm:$0xff]  ;;  %v751_v5 = vld [vmem:[%s3671_s1 + $0x2c0] sm:$0xff]  ;;  %v753_v15 = vld [vmem:[%s3671_s1 + $0x2d0] sm:$0xff] }
  0xe3   :  { %v1390_v19 = vrot.slane %v621_v3, %v2789_v51  ;;  %436 = vadd.xlane.f32.xlu1 %v435_v62  ;;  %v703_v3 = vld [vmem:[%s3671_s1 + $0x140] sm:$0xff]  ;;  %v147_v10 = vld [vmem:[%s3670_s0 + $0x3f0] sm:$0xff]  ;;  %v1998_v18 = vpack.c.bf16 %v753_v15, %v751_v5 }
  0xe4   :  { %v1306_v36 = vrot.slane %v604_v57, %v2647_v22  ;;  %385 = vadd.xlane.f32.xlu0 %v384_v26  ;;  %v500_v23 = vpop.xlane.xlu1 %499  ;;  %1941 = vmatprep.subr.bf16.mxu1 %v1940_v16  ;;  %v755_v37 = vld [vmem:[%s3671_s1 + $0x2e0] sm:$0xff]  ;;  %v131_v5 = vld [vmem:[%s3670_s0 + $0x370] sm:$0xff] }
  0xe5   :  { %v449_v24 = vpop.xlane.xlu0 %448  ;;  %v2945_v33 = vsel %vm977_vm6, %v1390_v19, %v2773_v44  ;;  %v651_v28 = vmul.f32 0.0625, %v500_v23  ;;  %1943 = vmatpush1.bf16.msra.mxu1 %v1942_v13  ;;  %1991 = vmatpush1.bf16.msra.mxu0 %v1990_v56  ;;  %v701_v44 = vld [vmem:[%s3671_s1 + $0x130] sm:$0xff]  ;;  %v130_v13 = vld [vmem:[%s3670_s0 + $0x368] sm:$0xff]  ;;  %v710_v56 = vld [vmem:[%s3671_s1 + $0x178] sm:$0xff] }
  0xe6   :  { %v2949_v34 = vsel %vm970_vm5, %v1306_v36, %v2777_v45  ;;  %v634_v31 = vmul.f32 0.0625, %v449_v24  ;;  %v1944_v45 = vpack.c.bf16 %v702_v30, %v700_v29  ;;  %v1946_v43 = vpack.c.bf16 %v701_v44, %v699_v41  ;;  %1993 = vmatprep.subr.bf16.mxu0 %v1992_v12  ;;  %v756_v23 = vld [vmem:[%s3671_s1 + $0x2e8] sm:$0xff]  ;;  %v758_v30 = vld [vmem:[%s3671_s1 + $0x2f8] sm:$0xff]  ;;  %v757_v41 = vld [vmem:[%s3671_s1 + $0x2f0] sm:$0xff] }
  0xe7   :  { %v1538_v47 = vrot.slane %v651_v28, %v2549_v7  ;;  %526 = vadd.xlane.f32.xlu1 %v525_v40  ;;  %v387_v36 = vsel %vm149_vm0, %v100_v48, 0.0  ;;  %v1952_v28 = vpack.c.bf16 %v710_v56, %v708_v63  ;;  %v84_v12 = vld [vmem:[%s3670_s0 + $0x1f8] sm:$0xff]  ;;  %v2002_v54 = vpack.c.bf16 %v757_v41, %v755_v37 }
  0xe8   :  { %v1454_v58 = vrot.slane %v634_v31, %v2491_v14  ;;  %475 = vadd.xlane.f32.xlu0 %v474_v25  ;;  %v221_v55 = vpop.xlane.xlu1 %220  ;;  %1945 = vmatprep.subr.bf16.mxu1 %v1944_v45  ;;  %v704_v14 = vld [vmem:[%s3671_s1 + $0x148] sm:$0xff]  ;;  %v2000_v31 = vpack.c.bf16 %v758_v30, %v756_v23  ;;  %v477_v48 = vsel %vm149_vm0, %v130_v13, 0.0  ;;  %v766_v23 = vld [vmem:[%s3671_s1 + $0x338] sm:$0xff] }
  0xe9   :  { %v170_v52 = vpop.xlane.xlu0 %169  ;;  %v2990_v62 = vsel %vm963_vm4, %v1538_v47, %v2818_v6  ;;  %v558_v0 = vmul.f32 0.0625, %v221_v55  ;;  %1947 = vmatpush1.bf16.msra.mxu1 %v1946_v43  ;;  %1995 = vmatpush1.bf16.msra.mxu0 %v1994_v11  ;;  %v705_v6 = vld [vmem:[%s3671_s1 + $0x150] sm:$0xff]  ;;  %v1948_v57 = vpack.c.bf16 %v706_v60, %v704_v14  ;;  %v714_v11 = vld [vmem:[%s3671_s1 + $0x198] sm:$0xff]  ;;  %v760_v55 = vld [vmem:[%s3671_s1 + $0x308] sm:$0xff] }
  0xea   :  { %v2994_v26 = vsel %vm956_vm3, %v1454_v58, %v2822_v8  ;;  %v541_v1 = vmul.f32 0.0625, %v170_v52  ;;  %v1996_v8 = vpack.c.bf16 %v754_v27, %v752_v61  ;;  %v1950_v4 = vpack.c.bf16 %v705_v6, %v703_v3  ;;  %v67_v43 = vld [vmem:[%s3670_s0 + $0x170] sm:$0xff]  ;;  %v762_v60 = vld [vmem:[%s3671_s1 + $0x318] sm:$0xff]  ;;  %v711_v61 = vld [vmem:[%s3671_s1 + $0x180] sm:$0xff] }
  0xeb   :  { %v1079_v9 = vrot.slane %v558_v0, %v2961_v42  ;;  %286 = vadd.xlane.f32.xlu1 %v285_v53  ;;  %1949 = vmatprep.subr.bf16.mxu1 %v1948_v57  ;;  %v528_v58 = vsel %vm149_vm0, %v147_v10, 0.0  ;;  %v986_v0 = vadd.s32 4294967232, %v2416_v17  ;;  %v759_v3 = vld [vmem:[%s3671_s1 + $0x300] sm:$0xff]  ;;  %v761_v6 = vld [vmem:[%s3671_s1 + $0x310] sm:$0xff]  ;;  %v339_v10 = vsel %vm149_vm0, %v84_v12, 0.0  ;;  %v132_v37 = vld [vmem:[%s3670_s0 + $0x378] sm:$0xff] }
  0xec   :  { %v976_v16 = vrot.slane %v541_v1, %v2789_v51  ;;  %196 = vadd.xlane.f32.xlu0 %v195_v59  ;;  %v311_v35 = vpop.xlane.xlu1 %310  ;;  %1997 = vmatprep.subr.bf16.mxu0 %v1996_v8  ;;  %v2004_v1 = vpack.c.bf16 %v762_v60, %v760_v55  ;;  %v2006_v15 = vpack.c.bf16 %v761_v6, %v759_v3  ;;  %v288_v13 = vsel %vm149_vm0, %v67_v43, 0.0  ;;  %v68_v41 = vld [vmem:[%s3670_s0 + $0x178] sm:$0xff] }
  0xed   :  { %v260_v19 = vpop.xlane.xlu0 %259  ;;  %v3032_v24 = vsel %vm984_vm7, %v1079_v9, %v2860_v38  ;;  %v588_v25 = vmul.f32 0.0625, %v311_v35  ;;  %1951 = vmatpush1.bf16.msra.mxu1 %v1950_v4  ;;  %1999 = vmatpush1.bf16.msra.mxu0 %v1998_v18  ;;  %v709_v38 = vld [vmem:[%s3671_s1 + $0x170] sm:$0xff]  ;;  %v148_v4 = vld [vmem:[%s3670_s0 + $0x3f8] sm:$0xff]  ;;  %v716_v18 = vld [vmem:[%s3671_s1 + $0x1a8] sm:$0xff]  ;;  %v483_v6 = vsel %vm149_vm0, %v132_v37, 0.0 }
  0xee   :  { %v3036_v40 = vsel %vm977_vm6, %v976_v16, %v2864_v39  ;;  %v571_v29 = vmul.f32 0.0625, %v260_v19  ;;  %v1954_v39 = vpack.c.bf16 %v709_v38, %v707_v32  ;;  %1953 = vmatprep.subr.bf16.mxu1 %v1952_v28  ;;  %2001 = vmatprep.subr.bf16.mxu0 %v2000_v31  ;;  %v718_v35 = vld [vmem:[%s3671_s1 + $0x1b8] sm:$0xff]  ;;  %v764_v19 = vld [vmem:[%s3671_s1 + $0x328] sm:$0xff]  ;;  %v763_v38 = vld [vmem:[%s3671_s1 + $0x320] sm:$0xff]  ;;  %v531_v43 = vsel %vm149_vm0, %v148_v4, 0.0 }
  0xef   :  { %v1227_v44 = vrot.slane %v588_v25, %v2647_v22  ;;  %388 = vadd.xlane.f32.xlu1 %v387_v36  ;;  %v715_v25 = vld [vmem:[%s3671_s1 + $0x1a0] sm:$0xff]  ;;  %v2008_v30 = vpack.c.bf16 %v766_v23, %v764_v19  ;;  %v765_v28 = vld [vmem:[%s3671_s1 + $0x330] sm:$0xff]  ;;  %v770_v55 = vld [vmem:[%s3671_s1 + $0x358] sm:$0xff] }
  0xf0   :  { %v1143_v45 = vrot.slane %v571_v29, %v2549_v7  ;;  %337 = vadd.xlane.f32.xlu0 %v336_v21  ;;  %v413_v46 = vpop.xlane.xlu1 %412  ;;  %v3133_v29 = vsub.s32 %v986_v0, %v2424_v20  ;;  %v726_v4 = vld [vmem:[%s3671_s1 + $0x1f8] sm:$0xff] }
  0xf1   :  { %v362_v47 = vpop.xlane.xlu0 %361  ;;  %v3074_v52 = vsel %vm970_vm5, %v1227_v44, %v2902_v2  ;;  %v622_v59 = vmul.f32 0.0625, %v413_v46  ;;  %1955 = vmatpush1.bf16.msra.mxu1 %v1954_v39  ;;  %2003 = vmatpush1.bf16.msra.mxu0 %v2002_v54  ;;  %v713_v2 = vld [vmem:[%s3671_s1 + $0x190] sm:$0xff]  ;;  %v2010_v44 = vpack.c.bf16 %v765_v28, %v763_v38  ;;  %v480_v54 = vsel %vm149_vm0, %v131_v5, 0.0  ;;  %v722_v46 = vld [vmem:[%s3671_s1 + $0x1d8] sm:$0xff]  ;;  %v772_v5 = vld [vmem:[%s3671_s1 + $0x368] sm:$0xff] }
  0xf2   :  { %v3078_v53 = vsel %vm963_vm4, %v1143_v45, %v2906_v50  ;;  %v605_v14 = vmul.f32 0.0625, %v362_v47  ;;  %v1956_v50 = vpack.c.bf16 %v714_v11, %v712_v49  ;;  %v1958_v27 = vpack.c.bf16 %v713_v2, %v711_v61  ;;  %2005 = vmatprep.subr.bf16.mxu0 %v2004_v1  ;;  %v768_v47 = vld [vmem:[%s3671_s1 + $0x348] sm:$0xff]  ;;  %v767_v61 = vld [vmem:[%s3671_s1 + $0x340] sm:$0xff]  ;;  %v769_v2 = vld [vmem:[%s3671_s1 + $0x350] sm:$0xff] }
  0xf3   :  { %v1395_v57 = vrot.slane %v622_v59, %v2961_v42  ;;  %529 = vadd.xlane.f32.xlu1 %v528_v58  ;;  %v719_v59 = vld [vmem:[%s3671_s1 + $0x1c0] sm:$0xff]  ;;  %v2014_v1 = vpack.c.bf16 %v769_v2, %v767_v61  ;;  %v778_v38 = vld [vmem:[%s3671_s1 + $0x398] sm:$0xff] }
  0xf4   :  { %v1311_v8 = vrot.slane %v605_v14, %v2789_v51  ;;  %478 = vadd.xlane.f32.xlu0 %v477_v48  ;;  %v503_v9 = vpop.xlane.xlu1 %502  ;;  %1957 = vmatprep.subr.bf16.mxu1 %v1956_v50 }
  0xf5   :  { %v452_v16 = vpop.xlane.xlu0 %451  ;;  %v3117_v36 = vsel %vm984_vm7, %v1395_v57, %v2945_v33  ;;  %v652_v63 = vmul.f32 0.0625, %v503_v9  ;;  %1959 = vmatpush1.bf16.msra.mxu1 %v1958_v27  ;;  %2007 = vmatpush1.bf16.msra.mxu0 %v2006_v15  ;;  %v717_v33 = vld [vmem:[%s3671_s1 + $0x1b0] sm:$0xff]  ;;  %v291_v57 = vsel %vm149_vm0, %v68_v41, 0.0  ;;  %v775_v41 = vld [vmem:[%s3671_s1 + $0x380] sm:$0xff]  ;;  %vm1595_vm0 = vcmask 1041409  }
  0xf6   :  { %v3121_v21 = vsel %vm977_vm6, %v1311_v8, %v2949_v34  ;;  %v635_v56 = vmul.f32 0.0625, %v452_v16  ;;  %v1960_v34 = vpack.c.bf16 %v718_v35, %v716_v18  ;;  %v1962_v32 = vpack.c.bf16 %v717_v33, %v715_v25  ;;  %2009 = vmatprep.subr.bf16.mxu0 %v2008_v30  ;;  %v724_v8 = vld [vmem:[%s3671_s1 + $0x1e8] sm:$0xff]  ;;  %v723_v18 = vld [vmem:[%s3671_s1 + $0x1e0] sm:$0xff] }
  0xf7   :  { %v1543_v31 = vrot.slane %v652_v63, %v2647_v22  ;;  %340 = vadd.xlane.f32.xlu1 %v339_v10  ;;  %v1968_v35 = vpack.c.bf16 %v726_v4, %v724_v8  ;;  %v771_v63 = vld [vmem:[%s3671_s1 + $0x360] sm:$0xff]  ;;  %v785_v8 = vld [vmem:[%s3671_s1 + $0x3d0] sm:$0xff] }
  0xf8   :  { %v1459_v39 = vrot.slane %v635_v56, %v2549_v7  ;;  %289 = vadd.xlane.f32.xlu0 %v288_v13  ;;  %v224_v45 = vpop.xlane.xlu1 %223  ;;  %1961 = vmatprep.subr.bf16.mxu1 %v1960_v34  ;;  %v720_v7 = vld [vmem:[%s3671_s1 + $0x1c8] sm:$0xff]  ;;  %v774_v13 = vld [vmem:[%s3671_s1 + $0x378] sm:$0xff]  ;;  %v773_v56 = vld [vmem:[%s3671_s1 + $0x370] sm:$0xff] }
  0xf9   :  { %v173_v12 = vpop.xlane.xlu0 %172  ;;  %v3162_v58 = vsel %vm970_vm5, %v1543_v31, %v2990_v62  ;;  %v559_v49 = vmul.f32 0.0625, %v224_v45  ;;  %1963 = vmatpush1.bf16.msra.mxu1 %v1962_v32  ;;  %2011 = vmatpush1.bf16.msra.mxu0 %v2010_v44  ;;  %v721_v62 = vld [vmem:[%s3671_s1 + $0x1d0] sm:$0xff]  ;;  %v1964_v14 = vpack.c.bf16 %v722_v46, %v720_v7  ;;  %v2016_v19 = vpack.c.bf16 %v774_v13, %v772_v5  ;;  %v776_v32 = vld [vmem:[%s3671_s1 + $0x388] sm:$0xff] }
  0xfa   :  { %v3166_v48 = vsel %vm963_vm4, %v1459_v39, %v2994_v26  ;;  %v542_v11 = vmul.f32 0.0625, %v173_v12  ;;  %v2012_v26 = vpack.c.bf16 %v770_v55, %v768_v47  ;;  %v1966_v60 = vpack.c.bf16 %v721_v62, %v719_v59  ;;  %v777_v44 = vld [vmem:[%s3671_s1 + $0x390] sm:$0xff]  ;;  %v780_v46 = vld [vmem:[%s3671_s1 + $0x3a8] sm:$0xff]  ;;  %v782_v47 = vld [vmem:[%s3671_s1 + $0x3b8] sm:$0xff] }
  0xfb   :  { %v1084_v0 = vrot.slane %v559_v49, %v3133_v29  ;;  %532 = vadd.xlane.f32.xlu1 %v531_v43  ;;  %1965 = vmatprep.subr.bf16.mxu1 %v1964_v14  ;;  %v2018_v33 = vpack.c.bf16 %v773_v56, %v771_v63  ;;  %v2020_v45 = vpack.c.bf16 %v778_v38, %v776_v32  ;;  %v779_v62 = vld [vmem:[%s3671_s1 + $0x3a0] sm:$0xff]  ;;  %v781_v14 = vld [vmem:[%s3671_s1 + $0x3b0] sm:$0xff]  ;;  %v788_v13 = vld [vmem:[%s3671_s1 + $0x3e8] sm:$0xff] }
  0xfc   :  { %v983_v50 = vrot.slane %v542_v11, %v2961_v42  ;;  %481 = vadd.xlane.f32.xlu0 %v480_v54  ;;  %v314_v27 = vpop.xlane.xlu1 %313  ;;  %2013 = vmatprep.subr.bf16.mxu0 %v2012_v26  ;;  %v2022_v12 = vpack.c.bf16 %v777_v44, %v775_v41  ;;  %v2024_v26 = vpack.c.bf16 %v782_v47, %v780_v46  ;;  %v787_v63 = vld [vmem:[%s3671_s1 + $0x3e0] sm:$0xff]  ;;  %v789_v56 = vld [vmem:[%s3671_s1 + $0x3f0] sm:$0xff]  ;;  %v1000_v44 = vadd.s32 4294967216, %v2416_v17 }
  0xfd   :  { %v263_v3 = vpop.xlane.xlu0 %262  ;;  %v3198_v15 = vsel %vm991_vm8, %v1084_v0, %v3032_v24  ;;  %v589_v16 = vmul.f32 0.0625, %v314_v27  ;;  %1967 = vmatpush1.bf16.msra.mxu1 %v1966_v60  ;;  %2015 = vmatpush1.bf16.msra.mxu0 %v2014_v1  ;;  %v725_v24 = vld [vmem:[%s3671_s1 + $0x1f0] sm:$0xff]  ;;  %v2026_v60 = vpack.c.bf16 %v781_v14, %v779_v62  ;;  %v786_v1 = vld [vmem:[%s3671_s1 + $0x3d8] sm:$0xff] }
  0xfe   :  { %v3202_v9 = vsel %vm984_vm7, %v983_v50, %v3036_v40  ;;  %v572_v10 = vmul.f32 0.0625, %v263_v3  ;;  %v1970_v40 = vpack.c.bf16 %v725_v24, %v723_v18  ;;  %1969 = vmatprep.subr.bf16.mxu1 %v1968_v35  ;;  %2017 = vmatprep.subr.bf16.mxu0 %v2016_v19  ;;  %v784_v50 = vld [vmem:[%s3671_s1 + $0x3c8] sm:$0xff]  ;;  %v790_v18 = vld [vmem:[%s3671_s1 + $0x3f8] sm:$0xff] }
  0xff   :  { %v1232_v23 = vrot.slane %v589_v16, %v2789_v51  ;;  %484 = vadd.xlane.f32.xlu1 %v483_v6  ;;  %v2028_v4 = vpack.c.bf16 %v786_v1, %v784_v50 }
 0x100   :  { %v1148_v25 = vrot.slane %v572_v10, %v2647_v22  ;;  %292 = vadd.xlane.f32.xlu0 %v291_v57  ;;  %v416_v34 = vpop.xlane.xlu1 %415  ;;  %v783_v57 = vld [vmem:[%s3671_s1 + $0x3c0] sm:$0xff] }
 0x101   :  { %v365_v30 = vpop.xlane.xlu0 %364  ;;  %v3229_v28 = vsel %vm977_vm6, %v1232_v23, %v3074_v52  ;;  %v623_v39 = vmul.f32 0.0625, %v416_v34  ;;  %1971 = vmatpush1.bf16.msra.mxu1 %v1970_v40  ;;  %2019 = vmatpush1.bf16.msra.mxu0 %v2018_v33  ;;  %v2030_v5 = vpack.c.bf16 %v785_v8, %v783_v57  ;;  %v2032_v23 = vpack.c.bf16 %v790_v18, %v788_v13 }
 0x102   :  { %v3233_v31 = vsel %vm970_vm5, %v1148_v25, %v3078_v53  ;;  %v606_v37 = vmul.f32 0.0625, %v365_v30  ;;  %v993_v53 = vadd.s32 4294967224, %v2416_v17  ;;  %2021 = vmatprep.subr.bf16.mxu0 %v2020_v45  ;;  %v2034_v25 = vpack.c.bf16 %v789_v56, %v787_v63  ;;  %v1764_v45 = vld [vmem:[%s3673_s3 + $0x80] sm:$0xff] }
 0x103   :  { %v1400_v52 = vrot.slane %v623_v39, %v3133_v29 }
 0x104   :  { %v1316_v43 = vrot.slane %v606_v37, %v2961_v42  ;;  %v506_v54 = vpop.xlane.xlu1 %505  ;;  %v3263_v2 = vsub.s32 %v993_v53, %v2424_v20 }
 0x105   :  { %v455_v7 = vpop.xlane.xlu0 %454  ;;  %v1401_v49 = vsel %vm991_vm8, %v1400_v52, %v3117_v36  ;;  %v653_v55 = vmul.f32 0.0625, %v506_v54  ;;  %2023 = vmatpush1.bf16.msra.mxu0 %v2022_v12 }
 0x106   :  { %v1317_v11 = vsel %vm984_vm7, %v1316_v43, %v3121_v21  ;;  %v636_v59 = vmul.f32 0.0625, %v455_v7  ;;  %2025 = vmatprep.subr.bf16.mxu0 %v2024_v26 }
 0x107   :  { %v1548_v61 = vrot.slane %v653_v55, %v2789_v51  ;;  %v3319_v55 = vsub.s32 %v1000_v44, %v2424_v20 }
 0x108   :  { %v1464_v36 = vrot.slane %v636_v59, %v2647_v22  ;;  %v227_v21 = vpop.xlane.xlu1 %226 }
 0x109   :  { %v176_v0 = vpop.xlane.xlu0 %175  ;;  %v1549_v27 = vsel %vm977_vm6, %v1548_v61, %v3162_v58  ;;  %v560_v3 = vmul.f32 0.0625, %v227_v21  ;;  %2027 = vmatpush1.bf16.msra.mxu0 %v2026_v60 }
 0x10a   :  { %v1465_v22 = vsel %vm970_vm5, %v1464_v36, %v3166_v48  ;;  %v543_v6 = vmul.f32 0.0625, %v176_v0  ;;  %2029 = vmatprep.subr.bf16.mxu0 %v2028_v4 }
 0x10b   :  { %v1089_v16 = vrot.slane %v560_v3, %v3263_v2 }
 0x10c   :  { %v990_v58 = vrot.slane %v543_v6, %v3133_v29  ;;  %v317_v10 = vpop.xlane.xlu1 %316 }
 0x10d   :  { %v266_v48 = vpop.xlane.xlu0 %265  ;;  %v1090_v24 = vsel %vm998_vm9, %v1089_v16, %v3198_v15  ;;  %v590_v19 = vmul.f32 0.0625, %v317_v10  ;;  %2031 = vmatpush1.bf16.msra.mxu0 %v2030_v5  ;;  %v1007_v10 = vadd.s32 4294967208, %v2416_v17 }
 0x10e   :  { %v992_v35 = vsel %vm991_vm8, %v990_v58, %v3202_v9  ;;  %v573_v40 = vmul.f32 0.0625, %v266_v48  ;;  %2033 = vmatprep.subr.bf16.mxu0 %v2032_v23 }
 0x10f   :  { %v1237_v33 = vrot.slane %v590_v19, %v2961_v42  ;;  %v3341_v56 = vsub.s32 %v1007_v10, %v2424_v20 }
 0x110   :  { %v1153_v15 = vrot.slane %v573_v40, %v2789_v51  ;;  %v419_v34 = vpop.xlane.xlu1 %418 }
 0x111   :  { %v368_v30 = vpop.xlane.xlu0 %367  ;;  %v1238_v9 = vsel %vm984_vm7, %v1237_v33, %v3229_v28  ;;  %v624_v38 = vmul.f32 0.0625, %v419_v34  ;;  %2035 = vmatpush1.bf16.msra.mxu0 %v2034_v25  ;;  %v1765_v28 = vld [vmem:[%s3673_s3 + $0x88] sm:$0xff] }
 0x112   :  { %v1154_v32 = vsel %vm977_vm6, %v1153_v15, %v3233_v31  ;;  %v607_v39 = vmul.f32 0.0625, %v368_v30  ;;  %v2036_v31 = vpack.c.bf16 %v1765_v28, %v1764_v45 }
 0x113   :  { %v1405_v37 = vrot.slane %v624_v38, %v3263_v2 }
 0x114   :  { %v1321_v41 = vrot.slane %v607_v39, %v3133_v29  ;;  %v509_v12 = vpop.xlane.xlu1 %508  ;;  %2037 = vmatprep.subr.bf16.mxu1 %v2036_v31 }
 0x115   :  { %v458_v52 = vpop.xlane.xlu0 %457  ;;  %v1406_v43 = vsel %vm998_vm9, %v1405_v37, %v1401_v49  ;;  %v654_v54 = vmul.f32 0.0625, %v509_v12 }
 0x116   :  { %v1322_v53 = vsel %vm991_vm8, %v1321_v41, %v1317_v11  ;;  %v637_v7 = vmul.f32 0.0625, %v458_v52 }
 0x117   :  { %v1553_v46 = vrot.slane %v654_v54, %v2961_v42 }
 0x118   :  { %v1469_v47 = vrot.slane %v637_v7, %v2789_v51  ;;  %v230_v59 = vpop.xlane.xlu1 %229 }
 0x119   :  { %v179_v62 = vpop.xlane.xlu0 %178  ;;  %v1554_v14 = vsel %vm984_vm7, %v1553_v46, %v1549_v27  ;;  %v561_v60 = vmul.f32 0.0625, %v230_v59 }
 0x11a   :  { %v1470_v26 = vsel %vm977_vm6, %v1469_v47, %v1465_v22  ;;  %v544_v49 = vmul.f32 0.0625, %v179_v62 }
 0x11b   :  { %v1094_v11 = vrot.slane %v561_v60, %v3319_v55 }
 0x11c   :  { %v997_v61 = vrot.slane %v544_v49, %v3263_v2  ;;  %v320_v36 = vpop.xlane.xlu1 %319 }
 0x11d   :  { %v269_v21 = vpop.xlane.xlu0 %268  ;;  %v1095_v51 = vsel %vm1005_vm10, %v1094_v11, %v1090_v24  ;;  %v591_v50 = vmul.f32 0.0625, %v320_v36 }
 0x11e   :  { %v999_v0 = vsel %vm998_vm9, %v997_v61, %v992_v35  ;;  %v574_v1 = vmul.f32 0.0625, %v269_v21 }
 0x11f   :  { %v1242_v3 = vrot.slane %v591_v50, %v3133_v29 }
 0x120   :  { %v1158_v27 = vrot.slane %v574_v1, %v2961_v42  ;;  %v422_v22 = vpop.xlane.xlu1 %421 }
 0x121   :  { %v371_v6 = vpop.xlane.xlu0 %370  ;;  %v1243_v57 = vsel %vm991_vm8, %v1242_v3, %v1238_v9  ;;  %v625_v4 = vmul.f32 0.0625, %v422_v22 }
 0x122   :  { %v1159_v8 = vsel %vm984_vm7, %v1158_v27, %v1154_v32  ;;  %v608_v5 = vmul.f32 0.0625, %v371_v6 }
 0x123   :  { %v1410_v16 = vrot.slane %v625_v4, %v3319_v55 }
 0x124   :  { %v1326_v58 = vrot.slane %v608_v5, %v3263_v2  ;;  %v512_v48 = vpop.xlane.xlu1 %511 }
 0x125   :  { %v461_v13 = vpop.xlane.xlu0 %460  ;;  %v3335_v18 = vsel %vm1005_vm10, %v1410_v16, %v1406_v43  ;;  %v655_v35 = vmul.f32 0.0625, %v512_v48 }
 0x126   :  { %v1327_v24 = vsel %vm998_vm9, %v1326_v58, %v1322_v53  ;;  %v638_v19 = vmul.f32 0.0625, %v461_v13 }
 0x127   :  { %v1558_v40 = vrot.slane %v655_v35, %v3133_v29 }
 0x128   :  { %v1474_v63 = vrot.slane %v638_v19, %v2961_v42  ;;  %v233_v23 = vpop.xlane.xlu1 %232 }
 0x129   :  { %v182_v25 = vpop.xlane.xlu0 %181  ;;  %v1559_v33 = vsel %vm991_vm8, %v1558_v40, %v1554_v14  ;;  %v562_v34 = vmul.f32 0.0625, %v233_v23 }
 0x12a   :  { %v1475_v15 = vsel %vm984_vm7, %v1474_v63, %v1470_v26  ;;  %v545_v30 = vmul.f32 0.0625, %v182_v25 }
 0x12b   :  { %v1099_v9 = vrot.slane %v562_v34, %v3341_v56 }
 0x12c   :  { %v1004_v32 = vrot.slane %v545_v30, %v3319_v55  ;;  %v323_v38 = vpop.xlane.xlu1 %322 }
 0x12d   :  { %v272_v39 = vpop.xlane.xlu0 %271  ;;  %v3348_v42 = vsel %vm1012_vm11, %v1099_v9, %v1095_v51  ;;  %v592_v41 = vmul.f32 0.0625, %v323_v38  ;;  %v1014_v38 = vadd.s32 4294967200, %v2416_v17 }
 0x12e   :  { %v1006_v37 = vsel %vm1005_vm10, %v1004_v32, %v999_v0  ;;  %v575_v44 = vmul.f32 0.0625, %v272_v39  ;;  %v1021_v39 = vadd.s32 4294967192, %v2416_v17 }
 0x12f   :  { %v1247_v45 = vrot.slane %v592_v41, %v3263_v2 }
 0x130   :  { %v1163_v28 = vrot.slane %v575_v44, %v3133_v29  ;;  %v425_v12 = vpop.xlane.xlu1 %424 }
 0x131   :  { %v374_v52 = vpop.xlane.xlu0 %373  ;;  %v1248_v31 = vsel %vm998_vm9, %v1247_v45, %v1243_v57  ;;  %v626_v45 = vmul.f32 0.0625, %v425_v12 }
 0x132   :  { %v1164_v43 = vsel %vm991_vm8, %v1163_v28, %v1159_v8  ;;  %v609_v53 = vmul.f32 0.0625, %v374_v52  ;;  %v1035_v28 = vadd.s32 4294967176, %v2416_v17  ;;  %v3408_v52 = vsub.s32 %v1014_v38, %v2424_v20 }
 0x134   :  { %v1331_v54 = vrot.slane %v609_v53, %v3319_v55  ;;  %v515_v7 = vpop.xlane.xlu1 %514  ;;  %v3411_v53 = vsub.s32 %v1021_v39, %v2424_v20 }
 0x135   :  { %v464_v46 = vpop.xlane.xlu0 %463  ;;  %v656_v59 = vmul.f32 0.0625, %v515_v7 }
 0x136   :  { %v3357_v47 = vsel %vm1005_vm10, %v1331_v54, %v1327_v24  ;;  %v639_v62 = vmul.f32 0.0625, %v464_v46 }
 0x137   :  { %v1563_v14 = vrot.slane %v656_v59, %v3263_v2 }
 0x138   :  { %v1479_v26 = vrot.slane %v639_v62, %v3133_v29  ;;  %v236_v60 = vpop.xlane.xlu1 %235 }
 0x139   :  { %v185_v49 = vpop.xlane.xlu0 %184  ;;  %v3362_v11 = vsel %vm998_vm9, %v1563_v14, %v1559_v33 }
 0x13a   :  { %v1480_v61 = vsel %vm991_vm8, %v1479_v26, %v1475_v15  ;;  %v546_v36 = vmul.f32 0.0625, %v185_v49  ;;  %v3422_v26 = vsub.s32 %v1035_v28, %v2424_v20 }
 0x13c   :  { %v1011_v21 = vrot.slane %v546_v36, %v3341_v56  ;;  %v326_v51 = vpop.xlane.xlu1 %325 }
 0x13d   :  { %v275_v0 = vpop.xlane.xlu0 %274  ;;  %v593_v1 = vmul.f32 0.0625, %v326_v51 }
 0x13e   :  { %v3367_v50 = vsel %vm1012_vm11, %v1011_v21, %v1006_v37  ;;  %v576_v3 = vmul.f32 0.0625, %v275_v0  ;;  %v1028_v37 = vadd.s32 4294967184, %v2416_v17  ;;  %v1415_v17 = vrot.slane %v626_v45, %v3341_v56 }
 0x13f   :  { %v1252_v27 = vrot.slane %v593_v1, %v3319_v55 }
 0x140   :  { %v1168_v29 = vrot.slane %v576_v3, %v3263_v2  ;;  %v428_v22 = vpop.xlane.xlu1 %427  ;;  %v3414_v46 = vsub.s32 %v1028_v37, %v2424_v20 }
 0x141   :  { %v3371_v6 = vpop.xlane.xlu0 %376  ;;  %v3374_v57 = vsel %vm1005_vm10, %v1252_v27, %v1248_v31  ;;  %v563_v31 = vmul.f32 0.0625, %v236_v60  ;;  %v1416_v27 = vsel %vm1012_vm11, %v1415_v17, %v3335_v18 }
 0x142   :  { %v3377_v8 = vsel %vm998_vm9, %v1168_v29, %v1164_v43  ;;  %v627_v43 = vmul.f32 0.0625, %v428_v22 }
 0x143   :  { %v1104_v49 = vrot.slane %v563_v31, %v3408_v52  ;;  %v3458_v31 = vld [vmem:[%s3673_s3 + $0x8] sm:$0xff] }
 0x144   :  { %v3379_v4 = vpop.xlane.xlu1 %517 }
 0x145   :  { %v467_v5 = vpop.xlane.xlu0 %466 }
 0x146   :  { %v640_v16 = vmul.f32 0.0625, %v467_v5  ;;  %v1105_v5 = vsel %vm1019_vm12, %v1104_v49, %v3348_v42 }
 0x148   :  { %v1484_v58 = vrot.slane %v640_v16, %v3263_v2  ;;  %v239_v10 = vpop.xlane.xlu1 %238 }
 0x149   :  { %v3382_v48 = vpop.xlane.xlu0 %187  ;;  %v564_v54 = vmul.f32 0.0625, %v239_v10 }
 0x14a   :  { %v3385_v13 = vsel %vm998_vm9, %v1484_v58, %v1480_v61  ;;  %v1420_v61 = vrot.slane %v627_v43, %v3408_v52 }
 0x14b   :  { %v1109_v36 = vrot.slane %v564_v54, %v3411_v53 }
 0x14c   :  { %v3387_v24 = vpop.xlane.xlu1 %328  ;;  %v1421_v16 = vsel %vm1019_vm12, %v1420_v61, %v1416_v27 }
 0x14d   :  { %v3389_v35 = vpop.xlane.xlu0 %277  ;;  %v1110_v10 = vsel %vm1026_vm13, %v1109_v36, %v1105_v5 }
 0x150   :  { %v431_v19 = vpop.xlane.xlu1 %430 }
 0x151   :  { %v380_v40 = vpop.xlane.xlu0 %379  ;;  %v628_v7 = vmul.f32 0.0625, %v431_v19 }
 0x152   :  { %v611_v45 = vmul.f32 0.0625, %v380_v40 }
 0x153   :  { %v1425_v21 = vrot.slane %v628_v7, %v3411_v53 }
 0x154   :  { %v3391_v63 = vpop.xlane.xlu1 %520 }
 0x155   :  { %v3393_v23 = vpop.xlane.xlu0 %469  ;;  %v1426_v19 = vsel %vm1026_vm13, %v1425_v21, %v1421_v16  ;;  %v594_v21 = vmul.f32 0.0625, %v3387_v24 }
 0x158   :  { %v242_v25 = vpop.xlane.xlu1 %241 }
 0x159   :  { %v191_v33 = vpop.xlane.xlu0 %190  ;;  %v565_v59 = vmul.f32 0.0625, %v242_v25  ;;  %v610_v25 = vmul.f32 0.0625, %v3371_v6  ;;  %v3453_v6 = vld [vmem:[%s3673_s3] sm:$0xff] }
 0x15a   :  { %v548_v43 = vmul.f32 0.0625, %v191_v33  ;;  %v3476_v33 = vld [vmem:[%s3673_s3 + $0x10] sm:$0xff]  ;;  %v2038_v61 = vpack.c.bf16 %v3458_v31, %v3453_v6 }
 0x15b   :  { %v1114_v51 = vrot.slane %v565_v59, %v3414_v46  ;;  %v1336_v40 = vrot.slane %v610_v25, %v3341_v56 }
 0x15c   :  { %v3395_v15 = vpop.xlane.xlu1 %331 }
 0x15d   :  { %v3397_v2 = vpop.xlane.xlu0 %280  ;;  %v1115_v38 = vsel %vm1033_vm14, %v1114_v51, %v1110_v10  ;;  %v577_v51 = vmul.f32 0.0625, %v3389_v35  ;;  %v641_v10 = vmul.f32 0.0625, %v3393_v23 }
 0x15e   :  { %v578_v6 = vmul.f32 0.0625, %v3397_v2 }
 0x160   :  { %v434_v34 = vpop.xlane.xlu1 %433 }
 0x161   :  { %v383_v30 = vpop.xlane.xlu0 %382  ;;  %v629_v62 = vmul.f32 0.0625, %v434_v34 }
 0x162   :  { %v612_v54 = vmul.f32 0.0625, %v383_v30  ;;  %v3481_v30 = vld [vmem:[%s3673_s3 + $0x18] sm:$0xff] }
 0x163   :  { %v1430_v0 = vrot.slane %v629_v62, %v3414_v46 }
 0x164   :  { %v3399_v9 = vpop.xlane.xlu1 %523 }
 0x165   :  { %v3401_v32 = vpop.xlane.xlu0 %472  ;;  %v1431_v42 = vsel %vm1033_vm14, %v1430_v0, %v1426_v19  ;;  %v1341_v0 = vrot.slane %v611_v45, %v3408_v52  ;;  %v1768_v45 = vld [vmem:[%s3673_s3 + $0xa0] sm:$0xff] }
 0x168   :  { %v245_v41 = vpop.xlane.xlu1 %244 }
 0x169   :  { %v194_v44 = vpop.xlane.xlu0 %193  ;;  %v566_v60 = vmul.f32 0.0625, %v245_v41  ;;  %v547_v41 = vmul.f32 0.0625, %v3382_v48  ;;  %v3463_v48 = vld [vmem:[%s3673_s3 + $0x90] sm:$0xff] }
 0x16a   :  { %v549_v7 = vmul.f32 0.0625, %v194_v44  ;;  %v657_v44 = vmul.f32 0.0625, %v3379_v4  ;;  %v2042_v4 = vpack.c.bf16 %v3481_v30, %v3476_v33 }
 0x16b   :  { %v1119_v29 = vrot.slane %v566_v60, %v3422_v26  ;;  %v3471_v60 = vld [vmem:[%s3673_s3 + $0x98] sm:$0xff]  ;;  %v1018_v36 = vrot.slane %v547_v41, %v3408_v52 }
 0x16c   :  { %v3416_v14 = vpop.xlane.xlu1 %334  ;;  %v2040_v27 = vpack.c.bf16 %v3471_v60, %v3463_v48  ;;  %v1032_v24 = vrot.slane %v549_v7, %v3414_v46  ;;  %v1489_v48 = vrot.slane %v641_v10, %v3319_v55 }
 0x16d   :  { %v3418_v12 = vpop.xlane.xlu0 %283  ;;  %v1120_v39 = vsel %vm1040_vm15, %v1119_v29, %v1115_v38  ;;  %v1337_v29 = vsel %vm1012_vm11, %v1336_v40, %v3357_v47  ;;  %v1020_v38 = vsel %vm1019_vm12, %v1018_v36, %v3367_v50  ;;  %v1257_v47 = vrot.slane %v594_v21, %v3341_v56  ;;  %v1769_v50 = vld [vmem:[%s3673_s3 + $0xa8] sm:$0xff] }
 0x16e   :  { %v659_v40 = vmul.f32 0.0625, %v3399_v9  ;;  %v596_v60 = vmul.f32 0.0625, %v3416_v14 }
 0x16f   :  { %v1258_v36 = vsel %vm1012_vm11, %v1257_v47, %v3374_v57  ;;  %v1490_v57 = vsel %vm1005_vm10, %v1489_v48, %v3385_v13 }
 0x170   :  { %v437_v1 = vpop.xlane.xlu1 %436 }
 0x171   :  { %v386_v3 = vpop.xlane.xlu0 %385  ;;  %v630_v22 = vmul.f32 0.0625, %v437_v1  ;;  %v1025_v1 = vrot.slane %v548_v43, %v3411_v53 }
 0x172   :  { %v613_v59 = vmul.f32 0.0625, %v386_v3  ;;  %v1346_v3 = vrot.slane %v612_v54, %v3411_v53 }
 0x173   :  { %v1435_v58 = vrot.slane %v630_v22, %v3422_v26  ;;  %v658_v22 = vmul.f32 0.0625, %v3391_v63  ;;  %v1173_v63 = vrot.slane %v577_v51, %v3319_v55 }
 0x174   :  { %v3440_v18 = vpop.xlane.xlu1 %526  ;;  %v1351_v35 = vrot.slane %v613_v59, %v3414_v46 }
 0x175   :  { %v3442_v34 = vpop.xlane.xlu0 %475  ;;  %v1436_v37 = vsel %vm1040_vm15, %v1435_v58, %v1431_v42  ;;  %v1568_v58 = vrot.slane %v657_v44, %v3319_v55  ;;  %v1342_v42 = vsel %vm1019_vm12, %v1341_v0, %v1337_v29  ;;  %v2044_v44 = vpack.c.bf16 %v1769_v50, %v1768_v45 }
 0x176   :  { %v1597_v28 = vsel %vm1595_vm0, %v1436_v37, %v1120_v39  ;;  %v1027_v39 = vsel %vm1026_vm13, %v1025_v1, %v1020_v38  ;;  %v595_v37 = vmul.f32 0.0625, %v3395_v15  ;;  %v1347_v41 = vsel %vm1026_vm13, %v1346_v3, %v1342_v42 }
 0x177   :  { %1668 = vmatprep.mubr.f32.mxu1 %v1597_v28  ;;  %v1573_v28 = vrot.slane %v658_v22, %v3341_v56  ;;  %v1034_v15 = vsel %vm1033_vm14, %v1032_v24, %v1027_v39  ;;  %v1352_v54 = vsel %vm1033_vm14, %v1351_v35, %v1347_v41  ;;  %v660_v9 = vmul.f32 0.0625, %v3440_v18 }
 0x178   :  { %v3466_v62 = vpop.xlane.xlu1 %286  ;;  %v1262_v55 = vrot.slane %v595_v37, %v3408_v52  ;;  %v1174_v21 = vsel %vm1005_vm10, %v1173_v63, %v3377_v8  ;;  %v1578_v3 = vrot.slane %v659_v40, %v3408_v52  ;;  %v1267_v8 = vrot.slane %v596_v60, %v3411_v53 }
 0x179   :  { %v197_v17 = vpop.xlane.xlu0 %196  ;;  %v579_v22 = vmul.f32 0.0625, %v3418_v12  ;;  %v643_v24 = vmul.f32 0.0625, %v3442_v34 }
 0x17a   :  { %v550_v49 = vmul.f32 0.0625, %v197_v17  ;;  %v642_v17 = vmul.f32 0.0625, %v3401_v32  ;;  %v1178_v32 = vrot.slane %v578_v6, %v3341_v56  ;;  %v1263_v35 = vsel %vm1019_vm12, %v1262_v55, %v1258_v36  ;;  %v1770_v55 = vld [vmem:[%s3673_s3 + $0xb0] sm:$0xff] }
 0x17b   :  { %v1183_v47 = vrot.slane %v579_v22, %v3408_v52  ;;  %v1499_v63 = vrot.slane %v643_v24, %v3408_v52  ;;  %v1268_v42 = vsel %vm1026_vm13, %v1267_v8, %v1263_v35  ;;  %v1758_v24 = vld [vmem:[%s3673_s3 + $0x50] sm:$0xff]  ;;  %v1759_v35 = vld [vmem:[%s3673_s3 + $0x58] sm:$0xff] }
 0x17c   :  { %v389_v5 = vpop.xlane.xlu1 %388  ;;  %v1039_v19 = vrot.slane %v550_v49, %v3422_v26  ;;  %v1569_v49 = vsel %vm1005_vm10, %v1568_v58, %v3362_v11  ;;  %v1494_v18 = vrot.slane %v642_v17, %v3341_v56  ;;  %v1179_v13 = vsel %vm1012_vm11, %v1178_v32, %v1174_v21  ;;  %v1754_v32 = vld [vmem:[%s3673_s3 + $0x30] sm:$0xff] }
 0x17d   :  { %v338_v16 = vpop.xlane.xlu0 %337  ;;  %v614_v25 = vmul.f32 0.0625, %v389_v5  ;;  %v1574_v11 = vsel %vm1012_vm11, %v1573_v28, %v1569_v49  ;;  %v580_v5 = vmul.f32 0.0625, %v3466_v62  ;;  %v1752_v49 = vld [vmem:[%s3673_s3 + $0x20] sm:$0xff] }
 0x17e   :  { %v1041_v7 = vsel %vm1040_vm15, %v1039_v19, %v1034_v15  ;;  %v597_v14 = vmul.f32 0.0625, %v338_v16  ;;  %v1579_v12 = vsel %vm1019_vm12, %v1578_v3, %v1574_v11  ;;  %v1495_v38 = vsel %vm1012_vm11, %v1494_v18, %v1490_v57  ;;  %v1756_v11 = vld [vmem:[%s3673_s3 + $0x40] sm:$0xff]  ;;  %v1757_v3 = vld [vmem:[%s3673_s3 + $0x48] sm:$0xff]  ;;  %v1775_v18 = vld [vmem:[%s3673_s3 + $0xd8] sm:$0xff] }
 0x17f   :  { %v1356_v23 = vrot.slane %v614_v25, %v3422_v26  ;;  %v1188_v39 = vrot.slane %v580_v5, %v3411_v53  ;;  %v1500_v15 = vsel %vm1019_vm12, %v1499_v63, %v1495_v38  ;;  %v2054_v8 = vpack.c.bf16 %v1757_v3, %v1756_v11  ;;  %v1777_v5 = vld [vmem:[%s3673_s3 + $0xe8] sm:$0xff] }
 0x180   :  { %v530_v31 = vpop.xlane.xlu1 %529  ;;  %v1272_v58 = vrot.slane %v597_v14, %v3414_v46  ;;  %v1755_v14 = vld [vmem:[%s3673_s3 + $0x38] sm:$0xff]  ;;  %v795_v63 = vsub.s32 0, %v2424_v20 }
 0x181   :  { %v479_v43 = vpop.xlane.xlu0 %478  ;;  %v1357_v59 = vsel %vm1040_vm15, %v1356_v23, %v1352_v54  ;;  %v661_v51 = vmul.f32 0.0625, %v530_v31 }
 0x182   :  { %v1596_v2 = vsel %vm1595_vm0, %v1357_v59, %v1041_v7  ;;  %v644_v16 = vmul.f32 0.0625, %v479_v43  ;;  %v1273_v50 = vsel %vm1033_vm14, %v1272_v58, %v1268_v42  ;;  %v1184_v43 = vsel %vm1019_vm12, %v1183_v47, %v1179_v13  ;;  %v1760_v58 = vld [vmem:[%s3673_s3 + $0x60] sm:$0xff] }
 0x183   :  { %1669 = vmatmul.mubr.f32.vlgmr.msra.gmra.mrb[0].mxu1 %v1596_v2  ;;  %v791_v42 = vld [vmem:[%s3672_s2] sm:$0x3]  ;;  %s2097_s2 = smov [#allocation2]  }
 0x184   :  { %v341_v0 = vpop.xlane.xlu1 %340  ;;  %2039 = vmatpush3.bf16.msra.mxu1 %v2038_v61  ;;  %v1583_v61 = vrot.slane %v660_v9, %v3411_v53  ;;  %v1504_v33 = vrot.slane %v644_v16, %v3411_v53  ;;  %v1771_v9 = vld [vmem:[%s3673_s3 + $0xb8] sm:$0xff]  ;;  %v2058_v16 = vpack.c.bf16 %v1759_v35, %v1758_v24  ;;  %s1864_s14 = sshll.u32 %s2097_s2, 4  ;;  %s1865_s14 = int_to_ptr.vmem [resolvable:$true] %s1864_s14 }
 0x185   :  { %v290_v1 = vpop.xlane.xlu0 %289  ;;  %v598_v29 = vmul.f32 0.0625, %v341_v0  ;;  %2041 = vmatprep.subr.bf16.mxu1 %v2040_v27  ;;  %v1588_v27 = vrot.slane %v661_v51, %v3414_v46  ;;  %v2048_v21 = vpack.c.bf16 %v1771_v9, %v1770_v55  ;;  %v2050_v51 = vpack.c.bf16 %v1755_v14, %v1754_v32  ;;  %v1772_v0 = vld [vmem:[%s3673_s3 + $0xc0] sm:$0xff]  ;;  %s2073_s15 = scalar_lea.vmem %s1865_s14, 32  ;;  %p2078_p1 = scmp.lt.s32.totalorder %s1865_s14, %s1865_s14 }
 0x186   :  { %v581_v56 = vmul.f32 0.0625, %v290_v1  ;;  %v1505_v48 = vsel %vm1026_vm13, %v1504_v33, %v1500_v15  ;;  %v1773_v1 = vld [vmem:[%s3673_s3 + $0xc8] sm:$0xff]  ;;  %v796_v33 = vrot.slane %v791_v42, %v795_v63  ;;  %p2074_p0 = scmp.ne.s32.totalorder %s1865_s14, %s2073_s15  ;;  %p2079_p2 = scmp.lt.s32.totalorder %s2073_s15, %s2073_s15 }
 0x187   :  { %v1277_v34 = vrot.slane %v598_v29, %v3422_v26  ;;  %v2052_v57 = vpack.c.bf16 %v1773_v1, %v1772_v0  ;;  %v1774_v29 = vld [vmem:[%s3673_s3 + $0xd0] sm:$0xff] }
 0x188   :  { %v533_v10 = vpop.xlane.xlu1 %532  ;;  %2043 = vmatpush3.bf16.msra.mxu1 %v2042_v4  ;;  %v1584_v4 = vsel %vm1026_vm13, %v1583_v61, %v1579_v12  ;;  %v1193_v37 = vrot.slane %v581_v56, %v3414_v46  ;;  %v2056_v22 = vpack.c.bf16 %v1775_v18, %v1774_v29  ;;  %v1776_v61 = vld [vmem:[%s3673_s3 + $0xe0] sm:$0xff]  ;;  %p2080_p3 = por %p2079_p2, %p2078_p1 }
 0x189   :  { %v482_v19 = vpop.xlane.xlu0 %481  ;;  %v662_v25 = vmul.f32 0.0625, %v533_v10  ;;  %2045 = vmatprep.subr.bf16.mxu1 %v2044_v44  ;;  %v1589_v52 = vsel %vm1033_vm14, %v1588_v27, %v1584_v4  ;;  %v1278_v31 = vsel %vm1040_vm15, %v1277_v34, %v1273_v50  ;;  %v2060_v13 = vpack.c.bf16 %v1777_v5, %v1776_v61  ;;  %v1761_v27 = vld [vmem:[%s3673_s3 + $0x68] sm:$0xff]  ;;  %v1778_v10 = vld [vmem:[%s3673_s3 + $0xf0] sm:$0xff] }
 0x18a   :  { %v645_v62 = vmul.f32 0.0625, %v482_v19  ;;  %v2062_v56 = vpack.c.bf16 %v1761_v27, %v1760_v58  ;;  %v1779_v19 = vld [vmem:[%s3673_s3 + $0xf8] sm:$0xff]  ;;  %v1762_v34 = vld [vmem:[%s3673_s3 + $0x70] sm:$0xff]  ;;  %p2081_p4 = pnand %p2080_p3, %p2074_p0 }
 0x18b   :  { %v1593_v30 = vrot.slane %v662_v25, %v3422_v26  ;;  %v2064_v12 = vpack.c.bf16 %v1779_v19, %v1778_v10  ;;  %v1763_v25 = vld [vmem:[%s3673_s3 + $0x78] sm:$0xff] }
 0x18c   :  { %v1509_v41 = vrot.slane %v645_v62, %v3414_v46  ;;  %v485_v23 = vpop.xlane.xlu1 %484  ;;  %v1189_v46 = vsel %vm1026_vm13, %v1188_v39, %v1184_v43  ;;  %v2066_v62 = vpack.c.bf16 %v1763_v25, %v1762_v34  ;;  %v799_v39 = vsub.s32 1, %v2424_v20 }
 0x18d   :  { %v293_v45 = vpop.xlane.xlu0 %292  ;;  %v646_v28 = vmul.f32 0.0625, %v485_v23  ;;  %v1594_v53 = vsel %vm1040_vm15, %v1593_v30, %v1589_v52  ;;  %v1194_v59 = vsel %vm1033_vm14, %v1193_v37, %v1189_v46 }
 0x18e   :  { %v582_v6 = vmul.f32 0.0625, %v293_v45  ;;  %v1599_v54 = vsel %vm1595_vm0, %v1594_v53, %v1278_v31  ;;  %v1510_v17 = vsel %vm1033_vm14, %v1509_v41, %v1505_v48  ;;  %v800_v30 = vrot.slane %v791_v42, %v799_v39  ;;  %v1872_v53 = vld [vmem:[%s3674_s4] ss:$0 sm:$0xff] }
 0x18f   :  { %v1514_v40 = vrot.slane %v646_v28, %v3422_v26  ;;  %1739 = vmatprep.mubr.f32.mxu0 %v1599_v54 }
 0x190   :  { %v1198_v7 = vrot.slane %v582_v6, %v3422_v26  ;;  %v1753_v26 = vld [vmem:[%s3673_s3 + $0x28] sm:$0xff] }
 0x191   :  { %v1515_v2 = vsel %vm1040_vm15, %v1514_v40, %v1510_v17  ;;  %v2046_v36 = vpack.c.bf16 %v1753_v26, %v1752_v49 }
 0x192   :  { %v1199_v60 = vsel %vm1040_vm15, %v1198_v7, %v1194_v59 }
 0x193   :  { %v1598_v44 = vsel %vm1595_vm0, %v1515_v2, %v1199_v60  ;;  %2047 = vmatpush3.bf16.msra.mxu1 %v2046_v36 }
 0x194   :  { %1740 = vmatmul.mubr.f32.vlgmr.msra.gmra.mrb[0].mxu0 %v1598_v44  ;;  %2049 = vmatprep.subr.bf16.mxu1 %v2048_v21 }
 0x197   :  { %2051 = vmatpush3.bf16.msra.mxu1 %v2050_v51 }
 0x198   :  { %2053 = vmatprep.subr.bf16.mxu1 %v2052_v57 }
 0x19b   :  { %2055 = vmatpush3.bf16.msra.mxu1 %v2054_v8 }
 0x19c   :  { %2057 = vmatprep.subr.bf16.mxu1 %v2056_v22 }
 0x19f   :  { %2059 = vmatpush3.bf16.msra.mxu1 %v2058_v16 }
 0x1a0   :  { %2061 = vmatprep.subr.bf16.mxu1 %v2060_v13 }
 0x1a3   :  { %2063 = vmatpush3.bf16.msra.mxu1 %v2062_v56 }
 0x1a4   :  { %2065 = vmatprep.subr.bf16.mxu1 %v2064_v12 }
 0x1a7   :  { %2067 = vmatpush3.bf16.msra.mxu1 %v2066_v62 }
 0x256   :  { %v1670_v38 = vpop.f32.mrb[0].mxu1 }
 0x257   :  { %v1672_v47 = vpop.f32.mrb[1].mxu1  ;;  %v1671_v4 = vadd.f32 %v1670_v38, %v796_v33 }
 0x258   :  { %v1673_v37 = vadd.f32 %v1672_v47, %v800_v30 }
 0x267   :  { %v1741_v41 = vpop.f32.mrb[0].mxu0 }
 0x268   :  { %v1742_v23 = vadd.f32 %v1741_v41, %v1671_v4  ;;  %v1743_v45 = vpop.f32.mrb[1].mxu0 }
 0x269   :  { %v1744_v50 = vadd.f32 %v1743_v45, %v1673_v37 }
 0x26a   :  { %v1746_v28 = vmax.f32 %v1742_v23, 0.0 }
 0x26b   :  { %v1747_v52 = vmax.f32 %v1744_v50, 0.0 }
 0x26d   :  { %1851 = vmatprep.mubr.f32.mxu1 %v1747_v52 }
 0x26e   :  { %1852 = vmatmul.mubr.f32.vlgmr.msra.gmra.mrb[2].mxu1 %v1746_v28 }
 0x341   :  { %v1905_v6 = vpop.f32.mrb[2].mxu1 }
 0x342   :  { %v1906_v31 = vpop.f32.mrb[3].mxu1 }
 0x343   :  { %v1907_v20 = vadd.f32 %v1906_v31, %v1905_v6 }
 0x345   :  { %v1854_v43 = vadd.f32 %v1907_v20, %v1872_v53 }
 0x347   :  { %1857 = vst [vmem:[#allocation2] sm:$0x3] %v1854_v43 }
 0x348   :  { %2084 = shalt.err (!%p2081_p4)
}
 0x349   :  { %s2085_s18 = scalar_lea.hbm %s3675_s5, 32 }
 0x34a   :  { %p2086_p5 = scmp.ne.s32.totalorder %s3675_s5, %s2085_s18  ;;  %p2089_p6 = scmp.lt.u32.totalorder %s2085_s18, %s3675_s5 }
 0x34c   :  { %p2091_p7 = pnand %p2089_p6, %p2086_p5 }
 0x34e   :  { %2094 = shalt.err (!%p2091_p7)
}
 0x34f   :  { %1867 = dma.vmem_to_hbm [thread:$0]  %s1865_s14, 32, %s3675_s5, [#allocation3]  }
 0x350   :  { %2095 = dma.done.wait [#allocation3], 32  }
 0x351   :  { %2096 = vsyncadd [#allocation3], 4294967264 }
 0x352   :  { %1871 = vsyncpa [#allocation3], 1 }

</bundles_post_ra>
